<compile_context>
chip_gen: v7x
topology: tpu7x:2x2x1
jax: 0.10.0
libtpu: 0.0.40
codegen_flags: <defaults>
</compile_context>

<pallas_src>
import jax
import jax.numpy as jnp
from jax import lax
from jax.experimental import pallas as pl
from jax.experimental.pallas import tpu as pltpu


# ------------------------- config (small synthetic BERT) -------------------
VOCAB = 64
MAX_POS = 32
TYPE_VOCAB = 2
HIDDEN = 32
NUM_HEADS = 2
HEAD_DIM = HIDDEN // NUM_HEADS
INTERMEDIATE = 64
NUM_LAYERS = 2
LN_EPS = 1e-12
MASK_NEG = -10000.0       # BERT-style additive mask for padded keys
CROSS_BATCH_NEG = -1e9    # stronger bias: cross-batch keys get exactly 0 weight


# ------------------------------ in-kernel helpers ---------------------------
def _layer_norm(x, g, b):
    mu = jnp.mean(x, axis=-1, keepdims=True)
    d = x - mu
    var = jnp.mean(d * d, axis=-1, keepdims=True)
    return d * lax.rsqrt(var + jnp.float32(LN_EPS)) * g + b


def _gelu_exact(y):
    # exact-erf GELU (matches HF BERT's "gelu")
    return 0.5 * y * (1.0 + lax.erf(y * jnp.float32(0.7071067811865476)))


# ------------------------------ fused encoder kernel ------------------------
def _encoder_kernel(x_ref, bias_ref, emb_g_ref, emb_b_ref,
                    wq_ref, bq_ref, wk_ref, bk_ref, wv_ref, bv_ref,
                    wo_ref, bo_ref, ln1_g_ref, ln1_b_ref,
                    w1_ref, b1_ref, w2_ref, b2_ref,
                    ln2_g_ref, ln2_b_ref, o_ref):
    scale = jnp.float32(1.0 / (HEAD_DIM ** 0.5))

    # Embedding LayerNorm (fused into the same kernel).
    x = _layer_norm(x_ref[...], emb_g_ref[...], emb_b_ref[...])      # (M, H)
    bias = bias_ref[...]                                             # (M, M)

    for l in range(NUM_LAYERS):
        # ---- multi-head self attention: all (B*S) rows at once per head ----
        attn_out = jnp.zeros(x.shape, jnp.float32)
        for h in range(NUM_HEADS):
            idx = l * NUM_HEADS + h
            q = jnp.dot(x, wq_ref[idx], preferred_element_type=jnp.float32) + bq_ref[idx]
            k = jnp.dot(x, wk_ref[idx], preferred_element_type=jnp.float32) + bk_ref[idx]
            v = jnp.dot(x, wv_ref[idx], preferred_element_type=jnp.float32) + bv_ref[idx]
            s = jnp.dot(q, k.T, preferred_element_type=jnp.float32) * scale + bias
            s = s - jnp.max(s, axis=-1, keepdims=True)
            p = jnp.exp(s)
            p = p * pl.reciprocal(jnp.sum(p, axis=-1, keepdims=True), approx=True)
            ctx = jnp.dot(p, v, preferred_element_type=jnp.float32)          # (M, Dh)
            # Per-head output projection; summing over heads == concat @ Wo.
            attn_out = attn_out + jnp.dot(ctx, wo_ref[idx],
                                          preferred_element_type=jnp.float32)
        attn_out = attn_out + bo_ref[l]
        x = _layer_norm(attn_out + x, ln1_g_ref[l], ln1_b_ref[l])    # residual fused

        # ---- feed forward (bias + exact-erf GELU fused in-kernel) ----
        hmid = _gelu_exact(jnp.dot(x, w1_ref[l], preferred_element_type=jnp.float32)
                           + b1_ref[l])
        ffn = jnp.dot(hmid, w2_ref[l], preferred_element_type=jnp.float32) + b2_ref[l]
        x = _layer_norm(ffn + x, ln2_g_ref[l], ln2_b_ref[l])         # residual fused

    o_ref[...] = x


# ------------------------------ parameter init ------------------------------
def init_params(key):
    H, NH, DH, I, L = HIDDEN, NUM_HEADS, HEAD_DIM, INTERMEDIATE, NUM_LAYERS

    def dense_w(k, fan_in, fan_out):
        return 0.02 * jax.random.normal(k, (fan_in, fan_out), jnp.float32)

    keys = jax.random.split(key, 3 + L)
    params = {
        "word_emb": 0.02 * jax.random.normal(keys[0], (VOCAB, H), jnp.float32),
        "pos_emb": 0.02 * jax.random.normal(keys[1], (MAX_POS, H), jnp.float32),
        "type_emb": 0.02 * jax.random.normal(keys[2], (TYPE_VOCAB, H), jnp.float32),
        "emb_ln_g": jnp.ones((1, H), jnp.float32),
        "emb_ln_b": jnp.zeros((1, H), jnp.float32),
    }

    wq, wk, wv, wo, w1, w2 = [], [], [], [], [], []
    for l in range(L):
        lk = jax.random.split(keys[3 + l], 6)
        # Pre-slice attention weights into per-head blocks so the kernel never
        # slices the lane dimension: q/k/v -> (NH, H, DH), out proj -> (NH, DH, H).
        wq.append(dense_w(lk[0], H, H).reshape(H, NH, DH).transpose(1, 0, 2))
        wk.append(dense_w(lk[1], H, H).reshape(H, NH, DH).transpose(1, 0, 2))
        wv.append(dense_w(lk[2], H, H).reshape(H, NH, DH).transpose(1, 0, 2))
        wo.append(dense_w(lk[3], H, H).reshape(NH, DH, H))
        w1.append(dense_w(lk[4], H, I))
        w2.append(dense_w(lk[5], I, H))

    params.update({
        "wq": jnp.concatenate(wq, axis=0),               # (L*NH, H, DH)
        "wk": jnp.concatenate(wk, axis=0),
        "wv": jnp.concatenate(wv, axis=0),
        "bq": jnp.zeros((L * NH, 1, DH), jnp.float32),
        "bk": jnp.zeros((L * NH, 1, DH), jnp.float32),
        "bv": jnp.zeros((L * NH, 1, DH), jnp.float32),
        "wo": jnp.concatenate(wo, axis=0),               # (L*NH, DH, H)
        "bo": jnp.zeros((L, 1, H), jnp.float32),
        "ln1_g": jnp.ones((L, 1, H), jnp.float32),
        "ln1_b": jnp.zeros((L, 1, H), jnp.float32),
        "w1": jnp.stack(w1, axis=0),                     # (L, H, I)
        "b1": jnp.zeros((L, 1, I), jnp.float32),
        "w2": jnp.stack(w2, axis=0),                     # (L, I, H)
        "b2": jnp.zeros((L, 1, H), jnp.float32),
        "ln2_g": jnp.ones((L, 1, H), jnp.float32),
        "ln2_b": jnp.zeros((L, 1, H), jnp.float32),
    })
    return params


# ------------------------------ forward pass --------------------------------
@jax.jit
def teacher_forward(params, input_ids, attention_mask, token_type_ids):
    B, S = input_ids.shape
    H = HIDDEN
    M = B * S

    # TODO(synk): embedding-table gather stays in plain JAX; no clean tiled
    # Pallas gather at this tiny scale.
    positions = jnp.arange(S, dtype=jnp.int32)
    emb = (params["word_emb"][input_ids]
           + params["pos_emb"][positions][None, :, :]
           + params["type_emb"][token_type_ids])                   # (B, S, H)
    x = emb.reshape(M, H).astype(jnp.float32)

    # Additive attention bias over the flattened (B*S) key axis:
    #   same batch & valid key ->     0
    #   same batch & padded key -> -10000  (BERT behaviour)
    #   different batch         ->  -1e9   (exactly zero weight after softmax)
    mask_f = attention_mask.astype(jnp.float32)                    # (B, S)
    key_mask = mask_f.reshape(M)
    batch_ids = jnp.repeat(jnp.arange(B, dtype=jnp.int32), S)
    same_batch = batch_ids[:, None] == batch_ids[None, :]
    attn_bias = jnp.where(same_batch,
                          (1.0 - key_mask)[None, :] * jnp.float32(MASK_NEG),
                          jnp.float32(CROSS_BATCH_NEG))            # (M, M)

    num_inputs = 20
    hidden = pl.pallas_call(
        _encoder_kernel,
        out_shape=jax.ShapeDtypeStruct((M, H), jnp.float32),
        in_specs=[pl.BlockSpec(memory_space=pltpu.MemorySpace.VMEM)] * num_inputs,
        out_specs=pl.BlockSpec(memory_space=pltpu.MemorySpace.VMEM),
    )(x, attn_bias,
      params["emb_ln_g"], params["emb_ln_b"],
      params["wq"], params["bq"], params["wk"], params["bk"],
      params["wv"], params["bv"], params["wo"], params["bo"],
      params["ln1_g"], params["ln1_b"], params["w1"], params["b1"],
      params["w2"], params["b2"], params["ln2_g"], params["ln2_b"])

    last_hidden = hidden.reshape(B, S, H)
    # matches: output.last_hidden_state.permute(1, 0, 2), 1.0 - attention_mask
    return last_hidden.transpose(1, 0, 2), 1.0 - mask_f


# ---------------------------------- main -------------------------------------
if __name__ == "__main__":
    B, S = 2, 8
    key = jax.random.PRNGKey(0)
    kp, kid = jax.random.split(key)

    params = init_params(kp)
    input_ids = jax.random.randint(kid, (B, S), 0, VOCAB, dtype=jnp.int32)
    attention_mask = jnp.array(
        [[1, 1, 1, 1, 1, 1, 1, 1],
         [1, 1, 1, 1, 1, 1, 0, 0]], dtype=jnp.int32)
    token_type_ids = jnp.zeros((B, S), dtype=jnp.int32)

    hidden_sbd, inv_mask = teacher_forward(params, input_ids, attention_mask,
                                           token_type_ids)
    jax.block_until_ready((hidden_sbd, inv_mask))

    assert hidden_sbd.shape == (S, B, HIDDEN), hidden_sbd.shape
    assert inv_mask.shape == (B, S), inv_mask.shape
    assert bool(jnp.all(jnp.isfinite(hidden_sbd)))
    print("KERNEL_OK")
</pallas_src>

<mosaic_0001>
module attributes {stable_mosaic.version = 11 : i64} {
  func.func @_encoder_kernel(%arg0: memref<16x32xf32, #tpu.memory_space<vmem>>, %arg1: memref<16x16xf32, #tpu.memory_space<vmem>>, %arg2: memref<1x32xf32, #tpu.memory_space<vmem>>, %arg3: memref<1x32xf32, #tpu.memory_space<vmem>>, %arg4: memref<4x32x16xf32, #tpu.memory_space<vmem>>, %arg5: memref<4x1x16xf32, #tpu.memory_space<vmem>>, %arg6: memref<4x32x16xf32, #tpu.memory_space<vmem>>, %arg7: memref<4x1x16xf32, #tpu.memory_space<vmem>>, %arg8: memref<4x32x16xf32, #tpu.memory_space<vmem>>, %arg9: memref<4x1x16xf32, #tpu.memory_space<vmem>>, %arg10: memref<4x16x32xf32, #tpu.memory_space<vmem>>, %arg11: memref<2x1x32xf32, #tpu.memory_space<vmem>>, %arg12: memref<2x1x32xf32, #tpu.memory_space<vmem>>, %arg13: memref<2x1x32xf32, #tpu.memory_space<vmem>>, %arg14: memref<2x32x64xf32, #tpu.memory_space<vmem>>, %arg15: memref<2x1x64xf32, #tpu.memory_space<vmem>>, %arg16: memref<2x64x32xf32, #tpu.memory_space<vmem>>, %arg17: memref<2x1x32xf32, #tpu.memory_space<vmem>>, %arg18: memref<2x1x32xf32, #tpu.memory_space<vmem>>, %arg19: memref<2x1x32xf32, #tpu.memory_space<vmem>>, %arg20: memref<16x32xf32, #tpu.memory_space<vmem>>) attributes {dimension_semantics = [], scalar_prefetch = 0 : i64, scratch_operands = 0 : i64, tpu.core_type = #tpu.core_type<tc>} {
    %c0 = arith.constant 0 : index
    %c0_0 = arith.constant 0 : index
    %0 = vector.load %arg0[%c0, %c0_0] : memref<16x32xf32, #tpu.memory_space<vmem>>, vector<16x32xf32>
    %c0_1 = arith.constant 0 : index
    %c0_2 = arith.constant 0 : index
    %1 = vector.load %arg2[%c0_1, %c0_2] : memref<1x32xf32, #tpu.memory_space<vmem>>, vector<1x32xf32>
    %c0_3 = arith.constant 0 : index
    %c0_4 = arith.constant 0 : index
    %2 = vector.load %arg3[%c0_3, %c0_4] : memref<1x32xf32, #tpu.memory_space<vmem>>, vector<1x32xf32>
    %cst = arith.constant dense<0.000000e+00> : vector<16xf32>
    %3 = vector.multi_reduction <add>, %0, %cst [1] : vector<16x32xf32> to vector<16xf32>
    %4 = vector.shape_cast %3 : vector<16xf32> to vector<16x1xf32>
    %cst_5 = arith.constant 3.200000e+01 : f32
    %5 = vector.broadcast %cst_5 : f32 to vector<16x1xf32>
    %6 = arith.divf %4, %5 : vector<16x1xf32>
    %7 = vector.broadcast %6 : vector<16x1xf32> to vector<16x32xf32>
    %8 = arith.subf %0, %7 : vector<16x32xf32>
    %9 = arith.mulf %8, %8 : vector<16x32xf32>
    %cst_6 = arith.constant dense<0.000000e+00> : vector<16xf32>
    %10 = vector.multi_reduction <add>, %9, %cst_6 [1] : vector<16x32xf32> to vector<16xf32>
    %11 = vector.shape_cast %10 : vector<16xf32> to vector<16x1xf32>
    %cst_7 = arith.constant 3.200000e+01 : f32
    %12 = vector.broadcast %cst_7 : f32 to vector<16x1xf32>
    %13 = arith.divf %11, %12 : vector<16x1xf32>
    %cst_8 = arith.constant 9.99999996E-13 : f32
    %14 = vector.broadcast %cst_8 : f32 to vector<16x1xf32>
    %15 = arith.addf %13, %14 : vector<16x1xf32>
    %16 = math.rsqrt %15 : vector<16x1xf32>
    %17 = vector.broadcast %16 : vector<16x1xf32> to vector<16x32xf32>
    %18 = arith.mulf %8, %17 : vector<16x32xf32>
    %19 = vector.broadcast %1 : vector<1x32xf32> to vector<16x32xf32>
    %20 = arith.mulf %18, %19 : vector<16x32xf32>
    %21 = vector.broadcast %2 : vector<1x32xf32> to vector<16x32xf32>
    %22 = arith.addf %20, %21 : vector<16x32xf32>
    %c0_9 = arith.constant 0 : index
    %c0_10 = arith.constant 0 : index
    %23 = vector.load %arg1[%c0_9, %c0_10] : memref<16x16xf32, #tpu.memory_space<vmem>>, vector<16x16xf32>
    %cst_11 = arith.constant 0.000000e+00 : f32
    %24 = vector.broadcast %cst_11 : f32 to vector<16x32xf32>
    %c0_12 = arith.constant 0 : index
    %c0_13 = arith.constant 0 : index
    %c0_14 = arith.constant 0 : index
    %25 = vector.load %arg4[%c0_12, %c0_13, %c0_14] : memref<4x32x16xf32, #tpu.memory_space<vmem>>, vector<1x32x16xf32>
    %26 = vector.shape_cast %25 : vector<1x32x16xf32> to vector<32x16xf32>
    %cst_15 = arith.constant dense<0.000000e+00> : vector<16x16xf32>
    %27 = tpu.matmul %22, %26, %cst_15 {dimension_numbers = #tpu.dot_dimension_numbers<[1], [0], [0], [1], [0, 0, 1, 1], [], []>} : vector<16x32xf32>, vector<32x16xf32>, vector<16x16xf32> -> vector<16x16xf32>
    %c0_16 = arith.constant 0 : index
    %c0_17 = arith.constant 0 : index
    %c0_18 = arith.constant 0 : index
    %28 = vector.load %arg5[%c0_16, %c0_17, %c0_18] : memref<4x1x16xf32, #tpu.memory_space<vmem>>, vector<1x1x16xf32>
    %29 = vector.shape_cast %28 : vector<1x1x16xf32> to vector<1x16xf32>
    %30 = vector.broadcast %29 : vector<1x16xf32> to vector<16x16xf32>
    %31 = arith.addf %27, %30 : vector<16x16xf32>
    %c0_19 = arith.constant 0 : index
    %c0_20 = arith.constant 0 : index
    %c0_21 = arith.constant 0 : index
    %32 = vector.load %arg6[%c0_19, %c0_20, %c0_21] : memref<4x32x16xf32, #tpu.memory_space<vmem>>, vector<1x32x16xf32>
    %33 = vector.shape_cast %32 : vector<1x32x16xf32> to vector<32x16xf32>
    %cst_22 = arith.constant dense<0.000000e+00> : vector<16x16xf32>
    %34 = tpu.matmul %22, %33, %cst_22 {dimension_numbers = #tpu.dot_dimension_numbers<[1], [0], [0], [1], [0, 0, 1, 1], [], []>} : vector<16x32xf32>, vector<32x16xf32>, vector<16x16xf32> -> vector<16x16xf32>
    %c0_23 = arith.constant 0 : index
    %c0_24 = arith.constant 0 : index
    %c0_25 = arith.constant 0 : index
    %35 = vector.load %arg7[%c0_23, %c0_24, %c0_25] : memref<4x1x16xf32, #tpu.memory_space<vmem>>, vector<1x1x16xf32>
    %36 = vector.shape_cast %35 : vector<1x1x16xf32> to vector<1x16xf32>
    %37 = vector.broadcast %36 : vector<1x16xf32> to vector<16x16xf32>
    %38 = arith.addf %34, %37 : vector<16x16xf32>
    %c0_26 = arith.constant 0 : index
    %c0_27 = arith.constant 0 : index
    %c0_28 = arith.constant 0 : index
    %39 = vector.load %arg8[%c0_26, %c0_27, %c0_28] : memref<4x32x16xf32, #tpu.memory_space<vmem>>, vector<1x32x16xf32>
    %40 = vector.shape_cast %39 : vector<1x32x16xf32> to vector<32x16xf32>
    %cst_29 = arith.constant dense<0.000000e+00> : vector<16x16xf32>
    %41 = tpu.matmul %22, %40, %cst_29 {dimension_numbers = #tpu.dot_dimension_numbers<[1], [0], [0], [1], [0, 0, 1, 1], [], []>} : vector<16x32xf32>, vector<32x16xf32>, vector<16x16xf32> -> vector<16x16xf32>
    %c0_30 = arith.constant 0 : index
    %c0_31 = arith.constant 0 : index
    %c0_32 = arith.constant 0 : index
    %42 = vector.load %arg9[%c0_30, %c0_31, %c0_32] : memref<4x1x16xf32, #tpu.memory_space<vmem>>, vector<1x1x16xf32>
    %43 = vector.shape_cast %42 : vector<1x1x16xf32> to vector<1x16xf32>
    %44 = vector.broadcast %43 : vector<1x16xf32> to vector<16x16xf32>
    %45 = arith.addf %41, %44 : vector<16x16xf32>
    %46 = tpu.transpose %38, [1, 0] : vector<16x16xf32> -> vector<16x16xf32>
    %cst_33 = arith.constant dense<0.000000e+00> : vector<16x16xf32>
    %47 = tpu.matmul %31, %46, %cst_33 {dimension_numbers = #tpu.dot_dimension_numbers<[1], [0], [0], [1], [0, 0, 1, 1], [], []>} : vector<16x16xf32>, vector<16x16xf32>, vector<16x16xf32> -> vector<16x16xf32>
    %cst_34 = arith.constant 2.500000e-01 : f32
    %48 = vector.broadcast %cst_34 : f32 to vector<16x16xf32>
    %49 = arith.mulf %47, %48 : vector<16x16xf32>
    %50 = arith.addf %49, %23 : vector<16x16xf32>
    %cst_35 = arith.constant dense<0xFF800000> : vector<16xf32>
    %51 = vector.multi_reduction <maximumf>, %50, %cst_35 [1] : vector<16x16xf32> to vector<16xf32>
    %52 = vector.shape_cast %51 : vector<16xf32> to vector<16x1xf32>
    %53 = vector.broadcast %52 : vector<16x1xf32> to vector<16x16xf32>
    %54 = arith.subf %50, %53 : vector<16x16xf32>
    %55 = math.exp %54 : vector<16x16xf32>
    %cst_36 = arith.constant dense<0.000000e+00> : vector<16xf32>
    %56 = vector.multi_reduction <add>, %55, %cst_36 [1] : vector<16x16xf32> to vector<16xf32>
    %57 = vector.shape_cast %56 : vector<16xf32> to vector<16x1xf32>
    %58 = tpu.reciprocal %57 {approx = true} : vector<16x1xf32> -> vector<16x1xf32>
    %59 = vector.broadcast %58 : vector<16x1xf32> to vector<16x16xf32>
    %60 = arith.mulf %55, %59 : vector<16x16xf32>
    %cst_37 = arith.constant dense<0.000000e+00> : vector<16x16xf32>
    %61 = tpu.matmul %60, %45, %cst_37 {dimension_numbers = #tpu.dot_dimension_numbers<[1], [0], [0], [1], [0, 0, 1, 1], [], []>} : vector<16x16xf32>, vector<16x16xf32>, vector<16x16xf32> -> vector<16x16xf32>
    %c0_38 = arith.constant 0 : index
    %c0_39 = arith.constant 0 : index
    %c0_40 = arith.constant 0 : index
    %62 = vector.load %arg10[%c0_38, %c0_39, %c0_40] : memref<4x16x32xf32, #tpu.memory_space<vmem>>, vector<1x16x32xf32>
    %63 = vector.shape_cast %62 : vector<1x16x32xf32> to vector<16x32xf32>
    %cst_41 = arith.constant dense<0.000000e+00> : vector<16x32xf32>
    %64 = tpu.matmul %61, %63, %cst_41 {dimension_numbers = #tpu.dot_dimension_numbers<[1], [0], [0], [1], [0, 0, 1, 1], [], []>} : vector<16x16xf32>, vector<16x32xf32>, vector<16x32xf32> -> vector<16x32xf32>
    %65 = arith.addf %24, %64 : vector<16x32xf32>
    %c1 = arith.constant 1 : index
    %c0_42 = arith.constant 0 : index
    %c0_43 = arith.constant 0 : index
    %66 = vector.load %arg4[%c1, %c0_42, %c0_43] : memref<4x32x16xf32, #tpu.memory_space<vmem>>, vector<1x32x16xf32>
    %67 = vector.shape_cast %66 : vector<1x32x16xf32> to vector<32x16xf32>
    %cst_44 = arith.constant dense<0.000000e+00> : vector<16x16xf32>
    %68 = tpu.matmul %22, %67, %cst_44 {dimension_numbers = #tpu.dot_dimension_numbers<[1], [0], [0], [1], [0, 0, 1, 1], [], []>} : vector<16x32xf32>, vector<32x16xf32>, vector<16x16xf32> -> vector<16x16xf32>
    %c1_45 = arith.constant 1 : index
    %c0_46 = arith.constant 0 : index
    %c0_47 = arith.constant 0 : index
    %69 = vector.load %arg5[%c1_45, %c0_46, %c0_47] : memref<4x1x16xf32, #tpu.memory_space<vmem>>, vector<1x1x16xf32>
    %70 = vector.shape_cast %69 : vector<1x1x16xf32> to vector<1x16xf32>
    %71 = vector.broadcast %70 : vector<1x16xf32> to vector<16x16xf32>
    %72 = arith.addf %68, %71 : vector<16x16xf32>
    %c1_48 = arith.constant 1 : index
    %c0_49 = arith.constant 0 : index
    %c0_50 = arith.constant 0 : index
    %73 = vector.load %arg6[%c1_48, %c0_49, %c0_50] : memref<4x32x16xf32, #tpu.memory_space<vmem>>, vector<1x32x16xf32>
    %74 = vector.shape_cast %73 : vector<1x32x16xf32> to vector<32x16xf32>
    %cst_51 = arith.constant dense<0.000000e+00> : vector<16x16xf32>
    %75 = tpu.matmul %22, %74, %cst_51 {dimension_numbers = #tpu.dot_dimension_numbers<[1], [0], [0], [1], [0, 0, 1, 1], [], []>} : vector<16x32xf32>, vector<32x16xf32>, vector<16x16xf32> -> vector<16x16xf32>
    %c1_52 = arith.constant 1 : index
    %c0_53 = arith.constant 0 : index
    %c0_54 = arith.constant 0 : index
    %76 = vector.load %arg7[%c1_52, %c0_53, %c0_54] : memref<4x1x16xf32, #tpu.memory_space<vmem>>, vector<1x1x16xf32>
    %77 = vector.shape_cast %76 : vector<1x1x16xf32> to vector<1x16xf32>
    %78 = vector.broadcast %77 : vector<1x16xf32> to vector<16x16xf32>
    %79 = arith.addf %75, %78 : vector<16x16xf32>
    %c1_55 = arith.constant 1 : index
    %c0_56 = arith.constant 0 : index
    %c0_57 = arith.constant 0 : index
    %80 = vector.load %arg8[%c1_55, %c0_56, %c0_57] : memref<4x32x16xf32, #tpu.memory_space<vmem>>, vector<1x32x16xf32>
    %81 = vector.shape_cast %80 : vector<1x32x16xf32> to vector<32x16xf32>
    %cst_58 = arith.constant dense<0.000000e+00> : vector<16x16xf32>
    %82 = tpu.matmul %22, %81, %cst_58 {dimension_numbers = #tpu.dot_dimension_numbers<[1], [0], [0], [1], [0, 0, 1, 1], [], []>} : vector<16x32xf32>, vector<32x16xf32>, vector<16x16xf32> -> vector<16x16xf32>
    %c1_59 = arith.constant 1 : index
    %c0_60 = arith.constant 0 : index
    %c0_61 = arith.constant 0 : index
    %83 = vector.load %arg9[%c1_59, %c0_60, %c0_61] : memref<4x1x16xf32, #tpu.memory_space<vmem>>, vector<1x1x16xf32>
    %84 = vector.shape_cast %83 : vector<1x1x16xf32> to vector<1x16xf32>
    %85 = vector.broadcast %84 : vector<1x16xf32> to vector<16x16xf32>
    %86 = arith.addf %82, %85 : vector<16x16xf32>
    %87 = tpu.transpose %79, [1, 0] : vector<16x16xf32> -> vector<16x16xf32>
    %cst_62 = arith.constant dense<0.000000e+00> : vector<16x16xf32>
    %88 = tpu.matmul %72, %87, %cst_62 {dimension_numbers = #tpu.dot_dimension_numbers<[1], [0], [0], [1], [0, 0, 1, 1], [], []>} : vector<16x16xf32>, vector<16x16xf32>, vector<16x16xf32> -> vector<16x16xf32>
    %cst_63 = arith.constant 2.500000e-01 : f32
    %89 = vector.broadcast %cst_63 : f32 to vector<16x16xf32>
    %90 = arith.mulf %88, %89 : vector<16x16xf32>
    %91 = arith.addf %90, %23 : vector<16x16xf32>
    %cst_64 = arith.constant dense<0xFF800000> : vector<16xf32>
    %92 = vector.multi_reduction <maximumf>, %91, %cst_64 [1] : vector<16x16xf32> to vector<16xf32>
    %93 = vector.shape_cast %92 : vector<16xf32> to vector<16x1xf32>
    %94 = vector.broadcast %93 : vector<16x1xf32> to vector<16x16xf32>
    %95 = arith.subf %91, %94 : vector<16x16xf32>
    %96 = math.exp %95 : vector<16x16xf32>
    %cst_65 = arith.constant dense<0.000000e+00> : vector<16xf32>
    %97 = vector.multi_reduction <add>, %96, %cst_65 [1] : vector<16x16xf32> to vector<16xf32>
    %98 = vector.shape_cast %97 : vector<16xf32> to vector<16x1xf32>
    %99 = tpu.reciprocal %98 {approx = true} : vector<16x1xf32> -> vector<16x1xf32>
    %100 = vector.broadcast %99 : vector<16x1xf32> to vector<16x16xf32>
    %101 = arith.mulf %96, %100 : vector<16x16xf32>
    %cst_66 = arith.constant dense<0.000000e+00> : vector<16x16xf32>
    %102 = tpu.matmul %101, %86, %cst_66 {dimension_numbers = #tpu.dot_dimension_numbers<[1], [0], [0], [1], [0, 0, 1, 1], [], []>} : vector<16x16xf32>, vector<16x16xf32>, vector<16x16xf32> -> vector<16x16xf32>
    %c1_67 = arith.constant 1 : index
    %c0_68 = arith.constant 0 : index
    %c0_69 = arith.constant 0 : index
    %103 = vector.load %arg10[%c1_67, %c0_68, %c0_69] : memref<4x16x32xf32, #tpu.memory_space<vmem>>, vector<1x16x32xf32>
    %104 = vector.shape_cast %103 : vector<1x16x32xf32> to vector<16x32xf32>
    %cst_70 = arith.constant dense<0.000000e+00> : vector<16x32xf32>
    %105 = tpu.matmul %102, %104, %cst_70 {dimension_numbers = #tpu.dot_dimension_numbers<[1], [0], [0], [1], [0, 0, 1, 1], [], []>} : vector<16x16xf32>, vector<16x32xf32>, vector<16x32xf32> -> vector<16x32xf32>
    %106 = arith.addf %65, %105 : vector<16x32xf32>
    %c0_71 = arith.constant 0 : index
    %c0_72 = arith.constant 0 : index
    %c0_73 = arith.constant 0 : index
    %107 = vector.load %arg11[%c0_71, %c0_72, %c0_73] : memref<2x1x32xf32, #tpu.memory_space<vmem>>, vector<1x1x32xf32>
    %108 = vector.shape_cast %107 : vector<1x1x32xf32> to vector<1x32xf32>
    %109 = vector.broadcast %108 : vector<1x32xf32> to vector<16x32xf32>
    %110 = arith.addf %106, %109 : vector<16x32xf32>
    %111 = arith.addf %110, %22 : vector<16x32xf32>
    %c0_74 = arith.constant 0 : index
    %c0_75 = arith.constant 0 : index
    %c0_76 = arith.constant 0 : index
    %112 = vector.load %arg12[%c0_74, %c0_75, %c0_76] : memref<2x1x32xf32, #tpu.memory_space<vmem>>, vector<1x1x32xf32>
    %113 = vector.shape_cast %112 : vector<1x1x32xf32> to vector<1x32xf32>
    %c0_77 = arith.constant 0 : index
    %c0_78 = arith.constant 0 : index
    %c0_79 = arith.constant 0 : index
    %114 = vector.load %arg13[%c0_77, %c0_78, %c0_79] : memref<2x1x32xf32, #tpu.memory_space<vmem>>, vector<1x1x32xf32>
    %115 = vector.shape_cast %114 : vector<1x1x32xf32> to vector<1x32xf32>
    %cst_80 = arith.constant dense<0.000000e+00> : vector<16xf32>
    %116 = vector.multi_reduction <add>, %111, %cst_80 [1] : vector<16x32xf32> to vector<16xf32>
    %117 = vector.shape_cast %116 : vector<16xf32> to vector<16x1xf32>
    %cst_81 = arith.constant 3.200000e+01 : f32
    %118 = vector.broadcast %cst_81 : f32 to vector<16x1xf32>
    %119 = arith.divf %117, %118 : vector<16x1xf32>
    %120 = vector.broadcast %119 : vector<16x1xf32> to vector<16x32xf32>
    %121 = arith.subf %111, %120 : vector<16x32xf32>
    %122 = arith.mulf %121, %121 : vector<16x32xf32>
    %cst_82 = arith.constant dense<0.000000e+00> : vector<16xf32>
    %123 = vector.multi_reduction <add>, %122, %cst_82 [1] : vector<16x32xf32> to vector<16xf32>
    %124 = vector.shape_cast %123 : vector<16xf32> to vector<16x1xf32>
    %cst_83 = arith.constant 3.200000e+01 : f32
    %125 = vector.broadcast %cst_83 : f32 to vector<16x1xf32>
    %126 = arith.divf %124, %125 : vector<16x1xf32>
    %cst_84 = arith.constant 9.99999996E-13 : f32
    %127 = vector.broadcast %cst_84 : f32 to vector<16x1xf32>
    %128 = arith.addf %126, %127 : vector<16x1xf32>
    %129 = math.rsqrt %128 : vector<16x1xf32>
    %130 = vector.broadcast %129 : vector<16x1xf32> to vector<16x32xf32>
    %131 = arith.mulf %121, %130 : vector<16x32xf32>
    %132 = vector.broadcast %113 : vector<1x32xf32> to vector<16x32xf32>
    %133 = arith.mulf %131, %132 : vector<16x32xf32>
    %134 = vector.broadcast %115 : vector<1x32xf32> to vector<16x32xf32>
    %135 = arith.addf %133, %134 : vector<16x32xf32>
    %c0_85 = arith.constant 0 : index
    %c0_86 = arith.constant 0 : index
    %c0_87 = arith.constant 0 : index
    %136 = vector.load %arg14[%c0_85, %c0_86, %c0_87] : memref<2x32x64xf32, #tpu.memory_space<vmem>>, vector<1x32x64xf32>
    %137 = vector.shape_cast %136 : vector<1x32x64xf32> to vector<32x64xf32>
    %cst_88 = arith.constant dense<0.000000e+00> : vector<16x64xf32>
    %138 = tpu.matmul %135, %137, %cst_88 {dimension_numbers = #tpu.dot_dimension_numbers<[1], [0], [0], [1], [0, 0, 1, 1], [], []>} : vector<16x32xf32>, vector<32x64xf32>, vector<16x64xf32> -> vector<16x64xf32>
    %c0_89 = arith.constant 0 : index
    %c0_90 = arith.constant 0 : index
    %c0_91 = arith.constant 0 : index
    %139 = vector.load %arg15[%c0_89, %c0_90, %c0_91] : memref<2x1x64xf32, #tpu.memory_space<vmem>>, vector<1x1x64xf32>
    %140 = vector.shape_cast %139 : vector<1x1x64xf32> to vector<1x64xf32>
    %141 = vector.broadcast %140 : vector<1x64xf32> to vector<16x64xf32>
    %142 = arith.addf %138, %141 : vector<16x64xf32>
    %cst_92 = arith.constant 5.000000e-01 : f32
    %143 = vector.broadcast %cst_92 : f32 to vector<16x64xf32>
    %144 = arith.mulf %143, %142 : vector<16x64xf32>
    %cst_93 = arith.constant 0.707106769 : f32
    %145 = vector.broadcast %cst_93 : f32 to vector<16x64xf32>
    %146 = arith.mulf %142, %145 : vector<16x64xf32>
    %147 = math.erf %146 : vector<16x64xf32>
    %cst_94 = arith.constant 1.000000e+00 : f32
    %148 = vector.broadcast %cst_94 : f32 to vector<16x64xf32>
    %149 = arith.addf %148, %147 : vector<16x64xf32>
    %150 = arith.mulf %144, %149 : vector<16x64xf32>
    %c0_95 = arith.constant 0 : index
    %c0_96 = arith.constant 0 : index
    %c0_97 = arith.constant 0 : index
    %151 = vector.load %arg16[%c0_95, %c0_96, %c0_97] : memref<2x64x32xf32, #tpu.memory_space<vmem>>, vector<1x64x32xf32>
    %152 = vector.shape_cast %151 : vector<1x64x32xf32> to vector<64x32xf32>
    %cst_98 = arith.constant dense<0.000000e+00> : vector<16x32xf32>
    %153 = tpu.matmul %150, %152, %cst_98 {dimension_numbers = #tpu.dot_dimension_numbers<[1], [0], [0], [1], [0, 0, 1, 1], [], []>} : vector<16x64xf32>, vector<64x32xf32>, vector<16x32xf32> -> vector<16x32xf32>
    %c0_99 = arith.constant 0 : index
    %c0_100 = arith.constant 0 : index
    %c0_101 = arith.constant 0 : index
    %154 = vector.load %arg17[%c0_99, %c0_100, %c0_101] : memref<2x1x32xf32, #tpu.memory_space<vmem>>, vector<1x1x32xf32>
    %155 = vector.shape_cast %154 : vector<1x1x32xf32> to vector<1x32xf32>
    %156 = vector.broadcast %155 : vector<1x32xf32> to vector<16x32xf32>
    %157 = arith.addf %153, %156 : vector<16x32xf32>
    %158 = arith.addf %157, %135 : vector<16x32xf32>
    %c0_102 = arith.constant 0 : index
    %c0_103 = arith.constant 0 : index
    %c0_104 = arith.constant 0 : index
    %159 = vector.load %arg18[%c0_102, %c0_103, %c0_104] : memref<2x1x32xf32, #tpu.memory_space<vmem>>, vector<1x1x32xf32>
    %160 = vector.shape_cast %159 : vector<1x1x32xf32> to vector<1x32xf32>
    %c0_105 = arith.constant 0 : index
    %c0_106 = arith.constant 0 : index
    %c0_107 = arith.constant 0 : index
    %161 = vector.load %arg19[%c0_105, %c0_106, %c0_107] : memref<2x1x32xf32, #tpu.memory_space<vmem>>, vector<1x1x32xf32>
    %162 = vector.shape_cast %161 : vector<1x1x32xf32> to vector<1x32xf32>
    %cst_108 = arith.constant dense<0.000000e+00> : vector<16xf32>
    %163 = vector.multi_reduction <add>, %158, %cst_108 [1] : vector<16x32xf32> to vector<16xf32>
    %164 = vector.shape_cast %163 : vector<16xf32> to vector<16x1xf32>
    %cst_109 = arith.constant 3.200000e+01 : f32
    %165 = vector.broadcast %cst_109 : f32 to vector<16x1xf32>
    %166 = arith.divf %164, %165 : vector<16x1xf32>
    %167 = vector.broadcast %166 : vector<16x1xf32> to vector<16x32xf32>
    %168 = arith.subf %158, %167 : vector<16x32xf32>
    %169 = arith.mulf %168, %168 : vector<16x32xf32>
    %cst_110 = arith.constant dense<0.000000e+00> : vector<16xf32>
    %170 = vector.multi_reduction <add>, %169, %cst_110 [1] : vector<16x32xf32> to vector<16xf32>
    %171 = vector.shape_cast %170 : vector<16xf32> to vector<16x1xf32>
    %cst_111 = arith.constant 3.200000e+01 : f32
    %172 = vector.broadcast %cst_111 : f32 to vector<16x1xf32>
    %173 = arith.divf %171, %172 : vector<16x1xf32>
    %cst_112 = arith.constant 9.99999996E-13 : f32
    %174 = vector.broadcast %cst_112 : f32 to vector<16x1xf32>
    %175 = arith.addf %173, %174 : vector<16x1xf32>
    %176 = math.rsqrt %175 : vector<16x1xf32>
    %177 = vector.broadcast %176 : vector<16x1xf32> to vector<16x32xf32>
    %178 = arith.mulf %168, %177 : vector<16x32xf32>
    %179 = vector.broadcast %160 : vector<1x32xf32> to vector<16x32xf32>
    %180 = arith.mulf %178, %179 : vector<16x32xf32>
    %181 = vector.broadcast %162 : vector<1x32xf32> to vector<16x32xf32>
    %182 = arith.addf %180, %181 : vector<16x32xf32>
    %cst_113 = arith.constant 0.000000e+00 : f32
    %183 = vector.broadcast %cst_113 : f32 to vector<16x32xf32>
    %c2 = arith.constant 2 : index
    %c0_114 = arith.constant 0 : index
    %c0_115 = arith.constant 0 : index
    %184 = vector.load %arg4[%c2, %c0_114, %c0_115] : memref<4x32x16xf32, #tpu.memory_space<vmem>>, vector<1x32x16xf32>
    %185 = vector.shape_cast %184 : vector<1x32x16xf32> to vector<32x16xf32>
    %cst_116 = arith.constant dense<0.000000e+00> : vector<16x16xf32>
    %186 = tpu.matmul %182, %185, %cst_116 {dimension_numbers = #tpu.dot_dimension_numbers<[1], [0], [0], [1], [0, 0, 1, 1], [], []>} : vector<16x32xf32>, vector<32x16xf32>, vector<16x16xf32> -> vector<16x16xf32>
    %c2_117 = arith.constant 2 : index
    %c0_118 = arith.constant 0 : index
    %c0_119 = arith.constant 0 : index
    %187 = vector.load %arg5[%c2_117, %c0_118, %c0_119] : memref<4x1x16xf32, #tpu.memory_space<vmem>>, vector<1x1x16xf32>
    %188 = vector.shape_cast %187 : vector<1x1x16xf32> to vector<1x16xf32>
    %189 = vector.broadcast %188 : vector<1x16xf32> to vector<16x16xf32>
    %190 = arith.addf %186, %189 : vector<16x16xf32>
    %c2_120 = arith.constant 2 : index
    %c0_121 = arith.constant 0 : index
    %c0_122 = arith.constant 0 : index
    %191 = vector.load %arg6[%c2_120, %c0_121, %c0_122] : memref<4x32x16xf32, #tpu.memory_space<vmem>>, vector<1x32x16xf32>
    %192 = vector.shape_cast %191 : vector<1x32x16xf32> to vector<32x16xf32>
    %cst_123 = arith.constant dense<0.000000e+00> : vector<16x16xf32>
    %193 = tpu.matmul %182, %192, %cst_123 {dimension_numbers = #tpu.dot_dimension_numbers<[1], [0], [0], [1], [0, 0, 1, 1], [], []>} : vector<16x32xf32>, vector<32x16xf32>, vector<16x16xf32> -> vector<16x16xf32>
    %c2_124 = arith.constant 2 : index
    %c0_125 = arith.constant 0 : index
    %c0_126 = arith.constant 0 : index
    %194 = vector.load %arg7[%c2_124, %c0_125, %c0_126] : memref<4x1x16xf32, #tpu.memory_space<vmem>>, vector<1x1x16xf32>
    %195 = vector.shape_cast %194 : vector<1x1x16xf32> to vector<1x16xf32>
    %196 = vector.broadcast %195 : vector<1x16xf32> to vector<16x16xf32>
    %197 = arith.addf %193, %196 : vector<16x16xf32>
    %c2_127 = arith.constant 2 : index
    %c0_128 = arith.constant 0 : index
    %c0_129 = arith.constant 0 : index
    %198 = vector.load %arg8[%c2_127, %c0_128, %c0_129] : memref<4x32x16xf32, #tpu.memory_space<vmem>>, vector<1x32x16xf32>
    %199 = vector.shape_cast %198 : vector<1x32x16xf32> to vector<32x16xf32>
    %cst_130 = arith.constant dense<0.000000e+00> : vector<16x16xf32>
    %200 = tpu.matmul %182, %199, %cst_130 {dimension_numbers = #tpu.dot_dimension_numbers<[1], [0], [0], [1], [0, 0, 1, 1], [], []>} : vector<16x32xf32>, vector<32x16xf32>, vector<16x16xf32> -> vector<16x16xf32>
    %c2_131 = arith.constant 2 : index
    %c0_132 = arith.constant 0 : index
    %c0_133 = arith.constant 0 : index
    %201 = vector.load %arg9[%c2_131, %c0_132, %c0_133] : memref<4x1x16xf32, #tpu.memory_space<vmem>>, vector<1x1x16xf32>
    %202 = vector.shape_cast %201 : vector<1x1x16xf32> to vector<1x16xf32>
    %203 = vector.broadcast %202 : vector<1x16xf32> to vector<16x16xf32>
    %204 = arith.addf %200, %203 : vector<16x16xf32>
    %205 = tpu.transpose %197, [1, 0] : vector<16x16xf32> -> vector<16x16xf32>
    %cst_134 = arith.constant dense<0.000000e+00> : vector<16x16xf32>
    %206 = tpu.matmul %190, %205, %cst_134 {dimension_numbers = #tpu.dot_dimension_numbers<[1], [0], [0], [1], [0, 0, 1, 1], [], []>} : vector<16x16xf32>, vector<16x16xf32>, vector<16x16xf32> -> vector<16x16xf32>
    %cst_135 = arith.constant 2.500000e-01 : f32
    %207 = vector.broadcast %cst_135 : f32 to vector<16x16xf32>
    %208 = arith.mulf %206, %207 : vector<16x16xf32>
    %209 = arith.addf %208, %23 : vector<16x16xf32>
    %cst_136 = arith.constant dense<0xFF800000> : vector<16xf32>
    %210 = vector.multi_reduction <maximumf>, %209, %cst_136 [1] : vector<16x16xf32> to vector<16xf32>
    %211 = vector.shape_cast %210 : vector<16xf32> to vector<16x1xf32>
    %212 = vector.broadcast %211 : vector<16x1xf32> to vector<16x16xf32>
    %213 = arith.subf %209, %212 : vector<16x16xf32>
    %214 = math.exp %213 : vector<16x16xf32>
    %cst_137 = arith.constant dense<0.000000e+00> : vector<16xf32>
    %215 = vector.multi_reduction <add>, %214, %cst_137 [1] : vector<16x16xf32> to vector<16xf32>
    %216 = vector.shape_cast %215 : vector<16xf32> to vector<16x1xf32>
    %217 = tpu.reciprocal %216 {approx = true} : vector<16x1xf32> -> vector<16x1xf32>
    %218 = vector.broadcast %217 : vector<16x1xf32> to vector<16x16xf32>
    %219 = arith.mulf %214, %218 : vector<16x16xf32>
    %cst_138 = arith.constant dense<0.000000e+00> : vector<16x16xf32>
    %220 = tpu.matmul %219, %204, %cst_138 {dimension_numbers = #tpu.dot_dimension_numbers<[1], [0], [0], [1], [0, 0, 1, 1], [], []>} : vector<16x16xf32>, vector<16x16xf32>, vector<16x16xf32> -> vector<16x16xf32>
    %c2_139 = arith.constant 2 : index
    %c0_140 = arith.constant 0 : index
    %c0_141 = arith.constant 0 : index
    %221 = vector.load %arg10[%c2_139, %c0_140, %c0_141] : memref<4x16x32xf32, #tpu.memory_space<vmem>>, vector<1x16x32xf32>
    %222 = vector.shape_cast %221 : vector<1x16x32xf32> to vector<16x32xf32>
    %cst_142 = arith.constant dense<0.000000e+00> : vector<16x32xf32>
    %223 = tpu.matmul %220, %222, %cst_142 {dimension_numbers = #tpu.dot_dimension_numbers<[1], [0], [0], [1], [0, 0, 1, 1], [], []>} : vector<16x16xf32>, vector<16x32xf32>, vector<16x32xf32> -> vector<16x32xf32>
    %224 = arith.addf %183, %223 : vector<16x32xf32>
    %c3 = arith.constant 3 : index
    %c0_143 = arith.constant 0 : index
    %c0_144 = arith.constant 0 : index
    %225 = vector.load %arg4[%c3, %c0_143, %c0_144] : memref<4x32x16xf32, #tpu.memory_space<vmem>>, vector<1x32x16xf32>
    %226 = vector.shape_cast %225 : vector<1x32x16xf32> to vector<32x16xf32>
    %cst_145 = arith.constant dense<0.000000e+00> : vector<16x16xf32>
    %227 = tpu.matmul %182, %226, %cst_145 {dimension_numbers = #tpu.dot_dimension_numbers<[1], [0], [0], [1], [0, 0, 1, 1], [], []>} : vector<16x32xf32>, vector<32x16xf32>, vector<16x16xf32> -> vector<16x16xf32>
    %c3_146 = arith.constant 3 : index
    %c0_147 = arith.constant 0 : index
    %c0_148 = arith.constant 0 : index
    %228 = vector.load %arg5[%c3_146, %c0_147, %c0_148] : memref<4x1x16xf32, #tpu.memory_space<vmem>>, vector<1x1x16xf32>
    %229 = vector.shape_cast %228 : vector<1x1x16xf32> to vector<1x16xf32>
    %230 = vector.broadcast %229 : vector<1x16xf32> to vector<16x16xf32>
    %231 = arith.addf %227, %230 : vector<16x16xf32>
    %c3_149 = arith.constant 3 : index
    %c0_150 = arith.constant 0 : index
    %c0_151 = arith.constant 0 : index
    %232 = vector.load %arg6[%c3_149, %c0_150, %c0_151] : memref<4x32x16xf32, #tpu.memory_space<vmem>>, vector<1x32x16xf32>
    %233 = vector.shape_cast %232 : vector<1x32x16xf32> to vector<32x16xf32>
    %cst_152 = arith.constant dense<0.000000e+00> : vector<16x16xf32>
    %234 = tpu.matmul %182, %233, %cst_152 {dimension_numbers = #tpu.dot_dimension_numbers<[1], [0], [0], [1], [0, 0, 1, 1], [], []>} : vector<16x32xf32>, vector<32x16xf32>, vector<16x16xf32> -> vector<16x16xf32>
    %c3_153 = arith.constant 3 : index
    %c0_154 = arith.constant 0 : index
    %c0_155 = arith.constant 0 : index
    %235 = vector.load %arg7[%c3_153, %c0_154, %c0_155] : memref<4x1x16xf32, #tpu.memory_space<vmem>>, vector<1x1x16xf32>
    %236 = vector.shape_cast %235 : vector<1x1x16xf32> to vector<1x16xf32>
    %237 = vector.broadcast %236 : vector<1x16xf32> to vector<16x16xf32>
    %238 = arith.addf %234, %237 : vector<16x16xf32>
    %c3_156 = arith.constant 3 : index
    %c0_157 = arith.constant 0 : index
    %c0_158 = arith.constant 0 : index
    %239 = vector.load %arg8[%c3_156, %c0_157, %c0_158] : memref<4x32x16xf32, #tpu.memory_space<vmem>>, vector<1x32x16xf32>
    %240 = vector.shape_cast %239 : vector<1x32x16xf32> to vector<32x16xf32>
    %cst_159 = arith.constant dense<0.000000e+00> : vector<16x16xf32>
    %241 = tpu.matmul %182, %240, %cst_159 {dimension_numbers = #tpu.dot_dimension_numbers<[1], [0], [0], [1], [0, 0, 1, 1], [], []>} : vector<16x32xf32>, vector<32x16xf32>, vector<16x16xf32> -> vector<16x16xf32>
    %c3_160 = arith.constant 3 : index
    %c0_161 = arith.constant 0 : index
    %c0_162 = arith.constant 0 : index
    %242 = vector.load %arg9[%c3_160, %c0_161, %c0_162] : memref<4x1x16xf32, #tpu.memory_space<vmem>>, vector<1x1x16xf32>
    %243 = vector.shape_cast %242 : vector<1x1x16xf32> to vector<1x16xf32>
    %244 = vector.broadcast %243 : vector<1x16xf32> to vector<16x16xf32>
    %245 = arith.addf %241, %244 : vector<16x16xf32>
    %246 = tpu.transpose %238, [1, 0] : vector<16x16xf32> -> vector<16x16xf32>
    %cst_163 = arith.constant dense<0.000000e+00> : vector<16x16xf32>
    %247 = tpu.matmul %231, %246, %cst_163 {dimension_numbers = #tpu.dot_dimension_numbers<[1], [0], [0], [1], [0, 0, 1, 1], [], []>} : vector<16x16xf32>, vector<16x16xf32>, vector<16x16xf32> -> vector<16x16xf32>
    %cst_164 = arith.constant 2.500000e-01 : f32
    %248 = vector.broadcast %cst_164 : f32 to vector<16x16xf32>
    %249 = arith.mulf %247, %248 : vector<16x16xf32>
    %250 = arith.addf %249, %23 : vector<16x16xf32>
    %cst_165 = arith.constant dense<0xFF800000> : vector<16xf32>
    %251 = vector.multi_reduction <maximumf>, %250, %cst_165 [1] : vector<16x16xf32> to vector<16xf32>
    %252 = vector.shape_cast %251 : vector<16xf32> to vector<16x1xf32>
    %253 = vector.broadcast %252 : vector<16x1xf32> to vector<16x16xf32>
    %254 = arith.subf %250, %253 : vector<16x16xf32>
    %255 = math.exp %254 : vector<16x16xf32>
    %cst_166 = arith.constant dense<0.000000e+00> : vector<16xf32>
    %256 = vector.multi_reduction <add>, %255, %cst_166 [1] : vector<16x16xf32> to vector<16xf32>
    %257 = vector.shape_cast %256 : vector<16xf32> to vector<16x1xf32>
    %258 = tpu.reciprocal %257 {approx = true} : vector<16x1xf32> -> vector<16x1xf32>
    %259 = vector.broadcast %258 : vector<16x1xf32> to vector<16x16xf32>
    %260 = arith.mulf %255, %259 : vector<16x16xf32>
    %cst_167 = arith.constant dense<0.000000e+00> : vector<16x16xf32>
    %261 = tpu.matmul %260, %245, %cst_167 {dimension_numbers = #tpu.dot_dimension_numbers<[1], [0], [0], [1], [0, 0, 1, 1], [], []>} : vector<16x16xf32>, vector<16x16xf32>, vector<16x16xf32> -> vector<16x16xf32>
    %c3_168 = arith.constant 3 : index
    %c0_169 = arith.constant 0 : index
    %c0_170 = arith.constant 0 : index
    %262 = vector.load %arg10[%c3_168, %c0_169, %c0_170] : memref<4x16x32xf32, #tpu.memory_space<vmem>>, vector<1x16x32xf32>
    %263 = vector.shape_cast %262 : vector<1x16x32xf32> to vector<16x32xf32>
    %cst_171 = arith.constant dense<0.000000e+00> : vector<16x32xf32>
    %264 = tpu.matmul %261, %263, %cst_171 {dimension_numbers = #tpu.dot_dimension_numbers<[1], [0], [0], [1], [0, 0, 1, 1], [], []>} : vector<16x16xf32>, vector<16x32xf32>, vector<16x32xf32> -> vector<16x32xf32>
    %265 = arith.addf %224, %264 : vector<16x32xf32>
    %c1_172 = arith.constant 1 : index
    %c0_173 = arith.constant 0 : index
    %c0_174 = arith.constant 0 : index
    %266 = vector.load %arg11[%c1_172, %c0_173, %c0_174] : memref<2x1x32xf32, #tpu.memory_space<vmem>>, vector<1x1x32xf32>
    %267 = vector.shape_cast %266 : vector<1x1x32xf32> to vector<1x32xf32>
    %268 = vector.broadcast %267 : vector<1x32xf32> to vector<16x32xf32>
    %269 = arith.addf %265, %268 : vector<16x32xf32>
    %270 = arith.addf %269, %182 : vector<16x32xf32>
    %c1_175 = arith.constant 1 : index
    %c0_176 = arith.constant 0 : index
    %c0_177 = arith.constant 0 : index
    %271 = vector.load %arg12[%c1_175, %c0_176, %c0_177] : memref<2x1x32xf32, #tpu.memory_space<vmem>>, vector<1x1x32xf32>
    %272 = vector.shape_cast %271 : vector<1x1x32xf32> to vector<1x32xf32>
    %c1_178 = arith.constant 1 : index
    %c0_179 = arith.constant 0 : index
    %c0_180 = arith.constant 0 : index
    %273 = vector.load %arg13[%c1_178, %c0_179, %c0_180] : memref<2x1x32xf32, #tpu.memory_space<vmem>>, vector<1x1x32xf32>
    %274 = vector.shape_cast %273 : vector<1x1x32xf32> to vector<1x32xf32>
    %cst_181 = arith.constant dense<0.000000e+00> : vector<16xf32>
    %275 = vector.multi_reduction <add>, %270, %cst_181 [1] : vector<16x32xf32> to vector<16xf32>
    %276 = vector.shape_cast %275 : vector<16xf32> to vector<16x1xf32>
    %cst_182 = arith.constant 3.200000e+01 : f32
    %277 = vector.broadcast %cst_182 : f32 to vector<16x1xf32>
    %278 = arith.divf %276, %277 : vector<16x1xf32>
    %279 = vector.broadcast %278 : vector<16x1xf32> to vector<16x32xf32>
    %280 = arith.subf %270, %279 : vector<16x32xf32>
    %281 = arith.mulf %280, %280 : vector<16x32xf32>
    %cst_183 = arith.constant dense<0.000000e+00> : vector<16xf32>
    %282 = vector.multi_reduction <add>, %281, %cst_183 [1] : vector<16x32xf32> to vector<16xf32>
    %283 = vector.shape_cast %282 : vector<16xf32> to vector<16x1xf32>
    %cst_184 = arith.constant 3.200000e+01 : f32
    %284 = vector.broadcast %cst_184 : f32 to vector<16x1xf32>
    %285 = arith.divf %283, %284 : vector<16x1xf32>
    %cst_185 = arith.constant 9.99999996E-13 : f32
    %286 = vector.broadcast %cst_185 : f32 to vector<16x1xf32>
    %287 = arith.addf %285, %286 : vector<16x1xf32>
    %288 = math.rsqrt %287 : vector<16x1xf32>
    %289 = vector.broadcast %288 : vector<16x1xf32> to vector<16x32xf32>
    %290 = arith.mulf %280, %289 : vector<16x32xf32>
    %291 = vector.broadcast %272 : vector<1x32xf32> to vector<16x32xf32>
    %292 = arith.mulf %290, %291 : vector<16x32xf32>
    %293 = vector.broadcast %274 : vector<1x32xf32> to vector<16x32xf32>
    %294 = arith.addf %292, %293 : vector<16x32xf32>
    %c1_186 = arith.constant 1 : index
    %c0_187 = arith.constant 0 : index
    %c0_188 = arith.constant 0 : index
    %295 = vector.load %arg14[%c1_186, %c0_187, %c0_188] : memref<2x32x64xf32, #tpu.memory_space<vmem>>, vector<1x32x64xf32>
    %296 = vector.shape_cast %295 : vector<1x32x64xf32> to vector<32x64xf32>
    %cst_189 = arith.constant dense<0.000000e+00> : vector<16x64xf32>
    %297 = tpu.matmul %294, %296, %cst_189 {dimension_numbers = #tpu.dot_dimension_numbers<[1], [0], [0], [1], [0, 0, 1, 1], [], []>} : vector<16x32xf32>, vector<32x64xf32>, vector<16x64xf32> -> vector<16x64xf32>
    %c1_190 = arith.constant 1 : index
    %c0_191 = arith.constant 0 : index
    %c0_192 = arith.constant 0 : index
    %298 = vector.load %arg15[%c1_190, %c0_191, %c0_192] : memref<2x1x64xf32, #tpu.memory_space<vmem>>, vector<1x1x64xf32>
    %299 = vector.shape_cast %298 : vector<1x1x64xf32> to vector<1x64xf32>
    %300 = vector.broadcast %299 : vector<1x64xf32> to vector<16x64xf32>
    %301 = arith.addf %297, %300 : vector<16x64xf32>
    %cst_193 = arith.constant 5.000000e-01 : f32
    %302 = vector.broadcast %cst_193 : f32 to vector<16x64xf32>
    %303 = arith.mulf %302, %301 : vector<16x64xf32>
    %cst_194 = arith.constant 0.707106769 : f32
    %304 = vector.broadcast %cst_194 : f32 to vector<16x64xf32>
    %305 = arith.mulf %301, %304 : vector<16x64xf32>
    %306 = math.erf %305 : vector<16x64xf32>
    %cst_195 = arith.constant 1.000000e+00 : f32
    %307 = vector.broadcast %cst_195 : f32 to vector<16x64xf32>
    %308 = arith.addf %307, %306 : vector<16x64xf32>
    %309 = arith.mulf %303, %308 : vector<16x64xf32>
    %c1_196 = arith.constant 1 : index
    %c0_197 = arith.constant 0 : index
    %c0_198 = arith.constant 0 : index
    %310 = vector.load %arg16[%c1_196, %c0_197, %c0_198] : memref<2x64x32xf32, #tpu.memory_space<vmem>>, vector<1x64x32xf32>
    %311 = vector.shape_cast %310 : vector<1x64x32xf32> to vector<64x32xf32>
    %cst_199 = arith.constant dense<0.000000e+00> : vector<16x32xf32>
    %312 = tpu.matmul %309, %311, %cst_199 {dimension_numbers = #tpu.dot_dimension_numbers<[1], [0], [0], [1], [0, 0, 1, 1], [], []>} : vector<16x64xf32>, vector<64x32xf32>, vector<16x32xf32> -> vector<16x32xf32>
    %c1_200 = arith.constant 1 : index
    %c0_201 = arith.constant 0 : index
    %c0_202 = arith.constant 0 : index
    %313 = vector.load %arg17[%c1_200, %c0_201, %c0_202] : memref<2x1x32xf32, #tpu.memory_space<vmem>>, vector<1x1x32xf32>
    %314 = vector.shape_cast %313 : vector<1x1x32xf32> to vector<1x32xf32>
    %315 = vector.broadcast %314 : vector<1x32xf32> to vector<16x32xf32>
    %316 = arith.addf %312, %315 : vector<16x32xf32>
    %317 = arith.addf %316, %294 : vector<16x32xf32>
    %c1_203 = arith.constant 1 : index
    %c0_204 = arith.constant 0 : index
    %c0_205 = arith.constant 0 : index
    %318 = vector.load %arg18[%c1_203, %c0_204, %c0_205] : memref<2x1x32xf32, #tpu.memory_space<vmem>>, vector<1x1x32xf32>
    %319 = vector.shape_cast %318 : vector<1x1x32xf32> to vector<1x32xf32>
    %c1_206 = arith.constant 1 : index
    %c0_207 = arith.constant 0 : index
    %c0_208 = arith.constant 0 : index
    %320 = vector.load %arg19[%c1_206, %c0_207, %c0_208] : memref<2x1x32xf32, #tpu.memory_space<vmem>>, vector<1x1x32xf32>
    %321 = vector.shape_cast %320 : vector<1x1x32xf32> to vector<1x32xf32>
    %cst_209 = arith.constant dense<0.000000e+00> : vector<16xf32>
    %322 = vector.multi_reduction <add>, %317, %cst_209 [1] : vector<16x32xf32> to vector<16xf32>
    %323 = vector.shape_cast %322 : vector<16xf32> to vector<16x1xf32>
    %cst_210 = arith.constant 3.200000e+01 : f32
    %324 = vector.broadcast %cst_210 : f32 to vector<16x1xf32>
    %325 = arith.divf %323, %324 : vector<16x1xf32>
    %326 = vector.broadcast %325 : vector<16x1xf32> to vector<16x32xf32>
    %327 = arith.subf %317, %326 : vector<16x32xf32>
    %328 = arith.mulf %327, %327 : vector<16x32xf32>
    %cst_211 = arith.constant dense<0.000000e+00> : vector<16xf32>
    %329 = vector.multi_reduction <add>, %328, %cst_211 [1] : vector<16x32xf32> to vector<16xf32>
    %330 = vector.shape_cast %329 : vector<16xf32> to vector<16x1xf32>
    %cst_212 = arith.constant 3.200000e+01 : f32
    %331 = vector.broadcast %cst_212 : f32 to vector<16x1xf32>
    %332 = arith.divf %330, %331 : vector<16x1xf32>
    %cst_213 = arith.constant 9.99999996E-13 : f32
    %333 = vector.broadcast %cst_213 : f32 to vector<16x1xf32>
    %334 = arith.addf %332, %333 : vector<16x1xf32>
    %335 = math.rsqrt %334 : vector<16x1xf32>
    %336 = vector.broadcast %335 : vector<16x1xf32> to vector<16x32xf32>
    %337 = arith.mulf %327, %336 : vector<16x32xf32>
    %338 = vector.broadcast %319 : vector<1x32xf32> to vector<16x32xf32>
    %339 = arith.mulf %337, %338 : vector<16x32xf32>
    %340 = vector.broadcast %321 : vector<1x32xf32> to vector<16x32xf32>
    %341 = arith.addf %339, %340 : vector<16x32xf32>
    %c0_214 = arith.constant 0 : index
    %c0_215 = arith.constant 0 : index
    %342 = vector.load %arg20[%c0_214, %c0_215] : memref<16x32xf32, #tpu.memory_space<vmem>>, vector<16x32xf32>
    tpu.vector_store %arg20[%c0_214, %c0_215], %341 {strides = array<i32>} : memref<16x32xf32, #tpu.memory_space<vmem>>, vector<16x32xf32>,
    return
  }
}

</mosaic_0001>

<bundles_post_ra>
// kernel: teacher_forward.1
= control target key start
LH: loop header
LB: loop body
LE: loop exit
PB: predicated region body
PF: predicated region fallthrough
CT: control target
= control target key end

     0   :  { %vm69_vm0 = vcmask 261120   ;;  %vm379_vm1 = vcmask 130048   ;;  %vm1371_vm3 = vcmask 523264   ;;  %s4368_s0 = inlined_call_operand.vmem [shape: f32[16,32], index: 0, kind: input, shape index: {}]   ;;  %s4369_s4 = inlined_call_operand.vmem [shape: f32[4,32,16], index: 4, kind: input, shape index: {}]   ;;  %s4370_s8 = inlined_call_operand.vmem [shape: f32[4,32,16], index: 8, kind: input, shape index: {}]   ;;  %s4371_s6 = inlined_call_operand.vmem [shape: f32[4,32,16], index: 6, kind: input, shape index: {}]   ;;  %s4372_s2 = inlined_call_operand.vmem [shape: f32[1,32], index: 2, kind: input, shape index: {}]   ;;  %s4373_s3 = inlined_call_operand.vmem [shape: f32[1,32], index: 3, kind: input, shape index: {}]   ;;  %s4374_s9 = inlined_call_operand.vmem [shape: f32[4,1,16], index: 9, kind: input, shape index: {}]   ;;  %s4375_s5 = inlined_call_operand.vmem [shape: f32[4,1,16], index: 5, kind: input, shape index: {}]   ;;  %s4376_s7 = inlined_call_operand.vmem [shape: f32[4,1,16], index: 7, kind: input, shape index: {}]   ;;  %s4377_s1 = inlined_call_operand.vmem [shape: f32[16,16], index: 1, kind: input, shape index: {}]   ;;  %s4378_s10 = inlined_call_operand.vmem [shape: f32[4,16,32], index: 10, kind: input, shape index: {}]   ;;  %s4379_s11 = inlined_call_operand.vmem [shape: f32[2,1,32], index: 11, kind: input, shape index: {}]   ;;  %s4380_s14 = inlined_call_operand.vmem [shape: f32[2,32,64], index: 14, kind: input, shape index: {}]   ;;  %s4381_s12 = inlined_call_operand.vmem [shape: f32[2,1,32], index: 12, kind: input, shape index: {}]   ;;  %s4382_s13 = inlined_call_operand.vmem [shape: f32[2,1,32], index: 13, kind: input, shape index: {}]   ;;  %s4383_s16 = inlined_call_operand.vmem [shape: f32[2,64,32], index: 16, kind: input, shape index: {}]   ;;  %s4384_s15 = inlined_call_operand.vmem [shape: f32[2,1,64], index: 15, kind: input, shape index: {}]   ;;  %s4385_s17 = inlined_call_operand.vmem [shape: f32[2,1,32], index: 17, kind: input, shape index: {}]   ;;  %s4386_s18 = inlined_call_operand.vmem [shape: f32[2,1,32], index: 18, kind: input, shape index: {}]   ;;  %s4387_s19 = inlined_call_operand.vmem [shape: f32[2,1,32], index: 19, kind: input, shape index: {}]   ;;  %s4388_s20 = inlined_call_operand.vmem [shape: f32[16,32], index: 20, kind: output, shape index: {}]  }
   0x1   :  { %4393 = sst [smem:[#allocation2_spill]] %s4368_s0  ;;  %v2904_v38 = vld [vmem:[%s4373_s3] ss:$0 sm:$0xff]  ;;  %vm3948_vm2 = vmpackc.low %vm379_vm1, %vm379_vm1 }
   0x2   :  { %4394 = sst [smem:[#allocation3_spill]] %s4369_s4  ;;  %s4398_s23 = sld [smem:[#allocation2_spill]]  ;;  %v2911_v48 = vld [vmem:[%s4374_s9] ss:$0 sm:$0xff] }
   0x3   :  { %4395 = sst [smem:[#allocation4_spill]] %s4370_s8  ;;  %s4399_s26 = sld [smem:[#allocation3_spill]]  ;;  %v2905_v49 = vld [vmem:[%s4375_s5] ss:$0 sm:$0xff] }
   0x4   :  { %4396 = sst [smem:[#allocation5_spill]] %s4371_s6  ;;  %s4400_s30 = sld [smem:[#allocation4_spill]]  ;;  %v2908_v58 = vld [vmem:[%s4376_s7] ss:$0 sm:$0xff] }
   0x5   :  { %4397 = sst [smem:[#allocation6_spill]] %s4372_s2  ;;  %s4401_s29 = sld [smem:[#allocation5_spill]] }
   0x8   :  { %v65_v0 = vld [vmem:[%s4398_s23] sm:$0xff]  ;;  %v66_v1 = vld [vmem:[%s4398_s23 + $0x8] sm:$0xff]  ;;  %s4402_s23 = sld [smem:[#allocation6_spill]] }
   0x9   :  { %v70_v2 = vsel %vm69_vm0, %v65_v0, 0.0  ;;  %v73_v3 = vsel %vm69_vm0, %v66_v1, 0.0  ;;  %v115_v14 = vld [vmem:[%s4399_s26] sm:$0xff]  ;;  %v116_v15 = vld [vmem:[%s4399_s26 + $0x8] sm:$0xff]  ;;  %v117_v20 = vld [vmem:[%s4399_s26 + $0x10] sm:$0xff] }
   0xa   :  { %71 = vadd.xlane.f32.xlu0 %v70_v2  ;;  %v3493_v16 = vpack.c.bf16 %v116_v15, %v115_v14  ;;  %v293_v17 = vld [vmem:[%s4400_s30] sm:$0xff]  ;;  %v294_v18 = vld [vmem:[%s4400_s30 + $0x8] sm:$0xff]  ;;  %v118_v21 = vld [vmem:[%s4399_s26 + $0x18] sm:$0xff] }
   0xb   :  { %v3509_v19 = vpack.c.bf16 %v294_v18, %v293_v17  ;;  %v3497_v22 = vpack.c.bf16 %v118_v21, %v117_v20  ;;  %v295_v23 = vld [vmem:[%s4400_s30 + $0x10] sm:$0xff]  ;;  %v296_v24 = vld [vmem:[%s4400_s30 + $0x18] sm:$0xff]  ;;  %v207_v26 = vld [vmem:[%s4401_s29] sm:$0xff] }
   0xc   :  { %3494 = vmatprep.subr.bf16.mxu1 %v3493_v16  ;;  %v3513_v25 = vpack.c.bf16 %v296_v24, %v295_v23  ;;  %v208_v27 = vld [vmem:[%s4401_s29 + $0x8] sm:$0xff]  ;;  %v209_v43 = vld [vmem:[%s4401_s29 + $0x10] sm:$0xff]  ;;  %v210_v44 = vld [vmem:[%s4401_s29 + $0x18] sm:$0xff] }
   0xd   :  { %3496 = vmatpush3.bf16.msra.mxu1 %v3493_v16  ;;  %3510 = vmatprep.subr.bf16.mxu0 %v3509_v19  ;;  %v3501_v28 = vpack.c.bf16 %v208_v27, %v207_v26  ;;  %v3505_v47 = vpack.c.bf16 %v210_v44, %v209_v43  ;;  %v2920_v62 = vld [vmem:[%s4399_s26 + $0x20] sm:$0xff]  ;;  %v2921_v63 = vld [vmem:[%s4399_s26 + $0x28] sm:$0xff] }
   0xe   :  { %74 = vadd.xlane.f32.xlu0 %v73_v3  ;;  %3512 = vmatpush3.bf16.msra.mxu0 %v3509_v19  ;;  %v2903_v36 = vld [vmem:[%s4402_s23] ss:$0 sm:$0xff]  ;;  %v3527_v3 = vpack.c.bf16 %v2921_v63, %v2920_v62  ;;  %v3986_v15 = vld [vmem:[%s4377_s1 + $0x8] sm:$0xff]  ;;  %v2925_v24 = vld [vmem:[%s4375_s5 + $0x1] ss:$0 sm:$0xff] }
   0xf   :  { %3498 = vmatprep.subr.bf16.mxu1 %v3497_v22  ;;  %3514 = vmatprep.subr.bf16.mxu0 %v3513_v25  ;;  %v3991_v18 = vld [vmem:[%s4377_s1] sm:$0xff] }
  0x11   :  { %3500 = vmatpush3.bf16.msra.mxu1 %v3497_v22 }
  0x12   :  { %3516 = vmatpush3.bf16.msra.mxu0 %v3513_v25  ;;  %3502 = vmatprep.subr.bf16.mxu1 %v3501_v28 }
  0x97   :  { %v72_v4 = vpop.xlane.xlu0 %71 }
  0x98   :  { %v77_v5 = vmul.f32 0.03125, %v72_v4  ;;  %v2922_v4 = vld [vmem:[%s4399_s26 + $0x30] sm:$0xff] }
  0x9a   :  { %v79_v6 = vsub.f32 %v65_v0, %v77_v5  ;;  %v2923_v5 = vld [vmem:[%s4399_s26 + $0x38] sm:$0xff] }
  0x9b   :  { %v75_v7 = vpop.xlane.xlu0 %74 }
  0x9c   :  { %v78_v8 = vmul.f32 0.03125, %v75_v7  ;;  %v81_v9 = vmul.f32 %v79_v6, %v79_v6  ;;  %v3531_v7 = vpack.c.bf16 %v2923_v5, %v2922_v4 }
  0x9e   :  { %v80_v10 = vsub.f32 %v66_v1, %v78_v8  ;;  %v83_v11 = vsel %vm69_vm0, %v81_v9, 0.0  ;;  %v2936_v8 = vld [vmem:[%s4400_s30 + $0x20] sm:$0xff]  ;;  %v2937_v9 = vld [vmem:[%s4400_s30 + $0x28] sm:$0xff] }
  0x9f   :  { %84 = vadd.xlane.f32.xlu1 %v83_v11  ;;  %v2938_v11 = vld [vmem:[%s4400_s30 + $0x30] sm:$0xff] }
  0xa0   :  { %v82_v12 = vmul.f32 %v80_v10, %v80_v10 }
  0xa2   :  { %v86_v13 = vsel %vm69_vm0, %v82_v12, 0.0  ;;  %v2939_v12 = vld [vmem:[%s4400_s30 + $0x38] sm:$0xff] }
  0xa3   :  { %87 = vadd.xlane.f32.xlu1 %v86_v13  ;;  %v3547_v13 = vpack.c.bf16 %v2939_v12, %v2938_v11 }
 0x12c   :  { %v85_v29 = vpop.xlane.xlu1 %84 }
 0x12d   :  { %v89_v30 = vmul.f32 0.03125, %v85_v29 }
 0x12f   :  { %v91_v31 = vadd.f32 1e-12, %v89_v30 }
 0x130   :  { %v88_v32 = vpop.xlane.xlu1 %87 }
 0x131   :  { %3697 = vrsqrt.f32 %v91_v31  ;;  %v90_v33 = vmul.f32 0.03125, %v88_v32 }
 0x133   :  { %v92_v34 = vadd.f32 1e-12, %v90_v33 }
 0x135   :  { %3699 = vrsqrt.f32 %v92_v34 }
 0x13b   :  { %v3698_v35 = vpop.eup %3697 }
 0x13c   :  { %v95_v37 = vmul.f32 %v3698_v35, %v79_v6 }
 0x13e   :  { %v103_v39 = vmul.f32 %v2903_v36, %v95_v37 }
 0x13f   :  { %v3700_v40 = vpop.eup %3699 }
 0x140   :  { %v3908_v41 = vadd.f32 %v2904_v38, %v103_v39  ;;  %v96_v42 = vmul.f32 %v3700_v40, %v80_v10  ;;  %v3543_v10 = vpack.c.bf16 %v2937_v9, %v2936_v8 }
 0x142   :  { %v104_v45 = vmul.f32 %v2903_v36, %v96_v42  ;;  %3225 = vmatprep.mubr.msk.f32.mxu1 %vm69_vm0, %v3908_v41  ;;  %3247 = vmatprep.mubr.msk.f32.mxu0 %vm69_vm0, %v3908_v41 }
 0x144   :  { %v3920_v46 = vadd.f32 %v2904_v38, %v104_v45  ;;  %v2928_v45 = vld [vmem:[%s4401_s29 + $0x20] sm:$0xff] }
 0x146   :  { %3226 = vmatmul.mubr.msk.f32.vlgmr.msra.gmra.mrb[0].mxu1 %vm69_vm0, %v3920_v46  ;;  %3248 = vmatmul.mubr.msk.f32.vlgmr.msra.gmra.mrb[0].mxu0 %vm69_vm0, %v3920_v46 }
 0x147   :  { %3504 = vmatpush3.bf16.msra.mxu1 %v3501_v28  ;;  %3236 = vmatprep.mubr.msk.f32.mxu1 %vm69_vm0, %v3908_v41  ;;  %v2941_v28 = vld [vmem:[%s4374_s9 + $0x1] ss:$0 sm:$0xff] }
 0x148   :  { %3506 = vmatprep.subr.bf16.mxu1 %v3505_v47 }
 0x14b   :  { %3508 = vmatpush3.bf16.msra.mxu1 %v3505_v47  ;;  %v2929_v47 = vld [vmem:[%s4401_s29 + $0x28] sm:$0xff] }
 0x14e   :  { %3237 = vmatmul.mubr.msk.f32.vlgmr.msra.gmra.mrb[2].mxu1 %vm69_vm0, %v3920_v46 }
 0x219   :  { %v3227_v50 = vpop.f32.mrb[0].mxu1  ;;  %v3249_v51 = vpop.f32.mrb[0].mxu0 }
 0x21a   :  { %v376_v52 = vadd.f32 %v3249_v51, %v2911_v48  ;;  %v198_v53 = vpop.f32.mrb[1].mxu1  ;;  %v370_v54 = vpop.f32.mrb[1].mxu0  ;;  %v204_v6 = vadd.f32 %v3227_v50, %v2905_v49 }
 0x21b   :  { %v199_v55 = vadd.f32 %v2905_v49, %v198_v53  ;;  %v371_v56 = vadd.f32 %v2911_v48, %v370_v54  ;;  %v3535_v48 = vpack.c.bf16 %v2929_v47, %v2928_v45  ;;  %v2931_v53 = vld [vmem:[%s4401_s29 + $0x38] sm:$0xff] }
 0x21d   :  { %v3523_v57 = vpack.c.bf16 %v376_v52, %v371_v56  ;;  %3254 = vmatprep.mubr.msk.f32.mxu1 %vm379_vm1, %v199_v55  ;;  %v2930_v52 = vld [vmem:[%s4401_s29 + $0x30] sm:$0xff] }
 0x21f   :  { %3524 = vmatprep.subr.bf16.mxu0 %v3523_v57 }
 0x220   :  { %3526 = vmatpush3.bf16.msra.mxu0 %v3523_v57  ;;  %v3539_v57 = vpack.c.bf16 %v2931_v53, %v2930_v52 }
 0x221   :  { %v3238_v59 = vpop.f32.mrb[2].mxu1  ;;  %3536 = vmatprep.subr.bf16.mxu0 %v3535_v48 }
 0x222   :  { %v290_v60 = vadd.f32 %v3238_v59, %v2908_v58  ;;  %v284_v61 = vpop.f32.mrb[3].mxu1 }
 0x223   :  { %v285_v0 = vadd.f32 %v2908_v58, %v284_v61  ;;  %v2933_v61 = vld [vmem:[%s4376_s7 + $0x1] ss:$0 sm:$0xff] }
 0x225   :  { %v3517_v2 = vpack.c.bf16 %v290_v60, %v285_v0 }
 0x227   :  { %3519 = vmatprep.subr.msk.bf16.mxu1 %vm3948_vm2, %v3517_v2 }
 0x228   :  { %3522 = vmatpush3.bf16.xpose.msk.msra.mxu1 %vm3948_vm2, %v3517_v2 }
 0x229   :  { %3528 = vmatprep.subr.bf16.mxu1 %v3527_v3 }
 0x22f   :  { %3255 = vmatmul.mubr.msk.f32.vlgmr.msra.gmra.mrb[4].mxu1 %vm379_vm1, %v204_v6 }
 0x230   :  { %3530 = vmatpush3.bf16.msra.mxu1 %v3527_v3  ;;  %3272 = vmatprep.mubr.msk.f32.mxu1 %vm69_vm0, %v3908_v41 }
 0x231   :  { %3532 = vmatprep.subr.bf16.mxu1 %v3531_v7 }
 0x234   :  { %3534 = vmatpush3.bf16.msra.mxu1 %v3531_v7 }
 0x235   :  { %3544 = vmatprep.subr.bf16.mxu1 %v3543_v10 }
 0x237   :  { %3273 = vmatmul.mubr.msk.f32.vlgmr.msra.gmra.mrb[6].mxu1 %vm69_vm0, %v3920_v46 }
 0x238   :  { %3546 = vmatpush3.bf16.msra.mxu1 %v3543_v10  ;;  %3294 = vmatprep.mubr.msk.f32.mxu1 %vm69_vm0, %v3908_v41 }
 0x239   :  { %3548 = vmatprep.subr.bf16.mxu1 %v3547_v13 }
 0x23c   :  { %3550 = vmatpush3.bf16.msra.mxu1 %v3547_v13 }
 0x23f   :  { %3295 = vmatmul.mubr.msk.f32.vlgmr.msra.gmra.mrb[8].mxu1 %vm69_vm0, %v3920_v46 }
 0x302   :  { %v3256_v14 = vpop.f32.mrb[4].mxu1 }
 0x303   :  { %v468_v16 = vmul.f32 0.25, %v3256_v14  ;;  %v458_v17 = vpop.f32.mrb[5].mxu1 }
 0x304   :  { %v467_v19 = vmul.f32 0.25, %v458_v17 }
 0x305   :  { %v470_v20 = vadd.f32 %v468_v16, %v3986_v15 }
 0x306   :  { %v469_v21 = vadd.f32 %v467_v19, %v3991_v18 }
 0x307   :  { %v474_v22 = vsel %vm379_vm1, %v470_v20, -inf }
 0x308   :  { %475 = vmax.xlane.f32.xlu1 %v474_v22  ;;  %v471_v23 = vsel %vm379_vm1, %v469_v21, -inf }
 0x309   :  { %472 = vmax.xlane.f32.xlu0 %v471_v23 }
 0x30a   :  { %v3274_v25 = vpop.f32.mrb[6].mxu1 }
 0x30b   :  { %v661_v26 = vadd.f32 %v3274_v25, %v2925_v24  ;;  %v655_v27 = vpop.f32.mrb[7].mxu1  ;;  %v2951_v25 = vld [vmem:[%s4378_s10 + $0x18] sm:$0xff] }
 0x30c   :  { %v656_v58 = vadd.f32 %v2925_v24, %v655_v27  ;;  %v2950_v24 = vld [vmem:[%s4378_s10 + $0x10] sm:$0xff] }
 0x312   :  { %v3296_v29 = vpop.f32.mrb[8].mxu1 }
 0x313   :  { %v837_v30 = vadd.f32 %v3296_v29, %v2941_v28  ;;  %v831_v31 = vpop.f32.mrb[9].mxu1 }
 0x314   :  { %v832_v32 = vadd.f32 %v2941_v28, %v831_v31 }
 0x316   :  { %v3557_v33 = vpack.c.bf16 %v837_v30, %v832_v32 }
 0x318   :  { %3558 = vmatprep.subr.bf16.mxu1 %v3557_v33 }
 0x319   :  { %3560 = vmatpush3.bf16.msra.mxu1 %v3557_v33  ;;  %v574_v33 = vld [vmem:[%s4378_s10] sm:$0xff] }
 0x395   :  { %v476_v34 = vpop.xlane.xlu1 %475 }
 0x396   :  { %v478_v35 = vsub.f32 %v470_v20, %v476_v34  ;;  %v473_v36 = vpop.xlane.xlu0 %472  ;;  %v575_v34 = vld [vmem:[%s4378_s10 + $0x8] sm:$0xff] }
 0x397   :  { %v477_v37 = vsub.f32 %v469_v21, %v473_v36 }
 0x398   :  { %v481_v38 = vmul.f32 1.442695, %v478_v35  ;;  %v3565_v35 = vpack.c.bf16 %v575_v34, %v574_v33 }
 0x399   :  { %v479_v39 = vmul.f32 1.442695, %v477_v37 }
 0x39a   :  { %3701 = vpow2.f32 %v481_v38  ;;  %v2956_v38 = vld [vmem:[%s4379_s11] ss:$0 sm:$0xff] }
 0x39b   :  { %3703 = vpow2.f32 %v479_v39 }
 0x3a4   :  { %v3702_v40 = vpop.eup %3701 }
 0x3a5   :  { %v3704_v42 = vpop.eup %3703  ;;  %v486_v43 = vsel %vm379_vm1, %v3702_v40, 0.0 }
 0x3a6   :  { %487 = vadd.xlane.f32.xlu1 %v486_v43  ;;  %v483_v44 = vsel %vm379_vm1, %v3704_v42, 0.0 }
 0x3a7   :  { %484 = vadd.xlane.f32.xlu0 %v483_v44 }
 0x433   :  { %v488_v49 = vpop.xlane.xlu1 %487 }
 0x434   :  { %3705 = vrcp.f32 %v488_v49  ;;  %v485_v50 = vpop.xlane.xlu0 %484 }
 0x435   :  { %3707 = vrcp.f32 %v485_v50 }
 0x43e   :  { %v3706_v51 = vpop.eup %3705 }
 0x43f   :  { %v3708_v54 = vpop.eup %3707  ;;  %v492_v56 = vmul.f32 %v3706_v51, %v3702_v40 }
 0x440   :  { %v491_v55 = vmul.f32 %v3708_v54, %v3704_v42 }
 0x442   :  { %3261 = vmatprep.mubr.msk.f32.mxu0 %vm379_vm1, %v491_v55 }
 0x443   :  { %3262 = vmatmul.mubr.msk.f32.vlgmr.msra.gmra.mrb[2].mxu0 %vm379_vm1, %v492_v56 }
 0x444   :  { %3538 = vmatpush3.bf16.msra.mxu0 %v3535_v48  ;;  %3283 = vmatprep.mubr.msk.f32.mxu0 %vm69_vm0, %v3908_v41 }
 0x445   :  { %3540 = vmatprep.subr.bf16.mxu0 %v3539_v57 }
 0x448   :  { %3542 = vmatpush3.bf16.msra.mxu0 %v3539_v57 }
 0x44b   :  { %3284 = vmatmul.mubr.msk.f32.vlgmr.msra.gmra.mrb[4].mxu0 %vm69_vm0, %v3920_v46 }
 0x44c   :  { %3301 = vmatprep.mubr.msk.f32.mxu0 %vm379_vm1, %v656_v58  ;;  %v1255_v58 = vld [vmem:[%s4380_s14 + $0x8] sm:$0xff] }
 0x516   :  { %v3263_v59 = vpop.f32.mrb[2].mxu0 }
 0x517   :  { %v565_v60 = vpop.f32.mrb[3].mxu0 }
 0x51e   :  { %v3285_v62 = vpop.f32.mrb[4].mxu0 }
 0x51f   :  { %v749_v63 = vadd.f32 %v3285_v62, %v2933_v61  ;;  %v743_v0 = vpop.f32.mrb[5].mxu0 }
 0x520   :  { %v744_v2 = vadd.f32 %v2933_v61, %v743_v0  ;;  %v1257_v61 = vld [vmem:[%s4380_s14 + $0x18] sm:$0xff] }
 0x522   :  { %v3551_v3 = vpack.c.bf16 %v749_v63, %v744_v2 }
 0x524   :  { %3553 = vmatprep.subr.msk.bf16.mxu0 %vm3948_vm2, %v3551_v3 }
 0x525   :  { %3556 = vmatpush3.bf16.xpose.msk.msra.mxu0 %vm3948_vm2, %v3551_v3 }
 0x52c   :  { %3302 = vmatmul.mubr.msk.f32.vlgmr.msra.gmra.mrb[6].mxu0 %vm379_vm1, %v661_v26  ;;  %v3561_v26 = vpack.c.bf16 %v2951_v25, %v2950_v24  ;;  %v1360_v24 = vld [vmem:[%s4383_s16 + $0x20] sm:$0xff]  ;;  %v1361_v25 = vld [vmem:[%s4383_s16 + $0x28] sm:$0xff] }
 0x52e   :  { %3562 = vmatprep.subr.bf16.mxu0 %v3561_v26 }
 0x52f   :  { %3564 = vmatpush3.bf16.msra.mxu0 %v3561_v26  ;;  %v3585_v26 = vpack.c.bf16 %v1361_v25, %v1360_v24  ;;  %v2965_v25 = vld [vmem:[%s4386_s18] ss:$0 sm:$0xff] }
 0x530   :  { %3566 = vmatprep.subr.bf16.mxu0 %v3565_v35 }
 0x5ff   :  { %v3303_v4 = vpop.f32.mrb[6].mxu0 }
 0x600   :  { %v928_v5 = vmul.f32 0.25, %v3303_v4  ;;  %v918_v6 = vpop.f32.mrb[7].mxu0 }
 0x601   :  { %v927_v7 = vmul.f32 0.25, %v918_v6 }
 0x602   :  { %v930_v8 = vadd.f32 %v928_v5, %v3986_v15 }
 0x603   :  { %v929_v9 = vadd.f32 %v927_v7, %v3991_v18  ;;  %v2957_v7 = vld [vmem:[%s4381_s12] ss:$0 sm:$0xff] }
 0x604   :  { %v934_v10 = vsel %vm379_vm1, %v930_v8, -inf }
 0x605   :  { %935 = vmax.xlane.f32.xlu1 %v934_v10  ;;  %v931_v11 = vsel %vm379_vm1, %v929_v9, -inf }
 0x606   :  { %932 = vmax.xlane.f32.xlu0 %v931_v11  ;;  %v2958_v11 = vld [vmem:[%s4382_s13] ss:$0 sm:$0xff] }
 0x692   :  { %v936_v12 = vpop.xlane.xlu1 %935 }
 0x693   :  { %v938_v13 = vsub.f32 %v930_v8, %v936_v12  ;;  %v933_v14 = vpop.xlane.xlu0 %932 }
 0x694   :  { %v937_v16 = vsub.f32 %v929_v9, %v933_v14 }
 0x695   :  { %v941_v17 = vmul.f32 1.442695, %v938_v13 }
 0x696   :  { %v939_v19 = vmul.f32 1.442695, %v937_v16 }
 0x697   :  { %3709 = vpow2.f32 %v941_v17  ;;  %v1356_v17 = vld [vmem:[%s4383_s16] sm:$0xff] }
 0x698   :  { %3711 = vpow2.f32 %v939_v19  ;;  %v1357_v19 = vld [vmem:[%s4383_s16 + $0x8] sm:$0xff] }
 0x6a1   :  { %v3710_v20 = vpop.eup %3709 }
 0x6a2   :  { %v3712_v21 = vpop.eup %3711  ;;  %v946_v22 = vsel %vm379_vm1, %v3710_v20, 0.0 }
 0x6a3   :  { %947 = vadd.xlane.f32.xlu1 %v946_v22  ;;  %v943_v23 = vsel %vm379_vm1, %v3712_v21, 0.0  ;;  %v1359_v22 = vld [vmem:[%s4383_s16 + $0x18] sm:$0xff] }
 0x6a4   :  { %944 = vadd.xlane.f32.xlu0 %v943_v23 }
 0x730   :  { %v948_v27 = vpop.xlane.xlu1 %947 }
 0x731   :  { %3713 = vrcp.f32 %v948_v27  ;;  %v945_v28 = vpop.xlane.xlu0 %944  ;;  %v1362_v27 = vld [vmem:[%s4383_s16 + $0x30] sm:$0xff] }
 0x732   :  { %3715 = vrcp.f32 %v945_v28  ;;  %v1363_v28 = vld [vmem:[%s4383_s16 + $0x38] sm:$0xff] }
 0x73b   :  { %v3714_v29 = vpop.eup %3713 }
 0x73c   :  { %v3716_v30 = vpop.eup %3715  ;;  %v952_v32 = vmul.f32 %v3714_v29, %v3710_v20  ;;  %v3577_v20 = vpack.c.bf16 %v1357_v19, %v1356_v17  ;;  %v3589_v29 = vpack.c.bf16 %v1363_v28, %v1362_v27 }
 0x73d   :  { %v951_v31 = vmul.f32 %v3716_v30, %v3712_v21  ;;  %v1358_v21 = vld [vmem:[%s4383_s16 + $0x10] sm:$0xff]  ;;  %v2959_v30 = vld [vmem:[%s4384_s15] ss:$0 sm:$0xff] }
 0x73e   :  { %v3581_v23 = vpack.c.bf16 %v1359_v22, %v1358_v21 }
 0x73f   :  { %3308 = vmatprep.mubr.msk.f32.mxu1 %vm379_vm1, %v951_v31 }
 0x740   :  { %3309 = vmatmul.mubr.msk.f32.vlgmr.msra.gmra.mrb[10].mxu1 %vm379_vm1, %v952_v32 }
 0x813   :  { %v3310_v36 = vpop.f32.mrb[10].mxu1 }
 0x814   :  { %v1025_v37 = vpop.f32.mrb[11].mxu1 }
 0x815   :  { %3315 = vmatprep.mubr.msk.f32.mxu0 %vm379_vm1, %v1025_v37 }
 0x816   :  { %3316 = vmatmul.mubr.msk.f32.vlgmr.msra.gmra.mrb[8].mxu0 %vm379_vm1, %v3310_v36 }
 0x817   :  { %3568 = vmatpush3.bf16.msra.mxu0 %v3565_v35  ;;  %3322 = vmatprep.mubr.msk.f32.mxu0 %vm379_vm1, %v565_v60  ;;  %v1256_v60 = vld [vmem:[%s4380_s14 + $0x10] sm:$0xff] }
 0x818   :  { %v3573_v62 = vpack.c.bf16 %v1257_v61, %v1256_v60  ;;  %3578 = vmatprep.subr.bf16.mxu0 %v3577_v20 }
 0x81e   :  { %3323 = vmatmul.mubr.msk.f32.vlgmr.msra.gmra.mrb[8].mxu0 %vm379_vm1, %v3263_v59 }
 0x81f   :  { %3580 = vmatpush3.bf16.msra.mxu0 %v3577_v20 }
 0x820   :  { %3582 = vmatprep.subr.bf16.mxu0 %v3581_v23 }
 0x823   :  { %3584 = vmatpush3.bf16.msra.mxu0 %v3581_v23 }
 0x824   :  { %3586 = vmatprep.subr.bf16.mxu0 %v3585_v26 }
 0x827   :  { %3588 = vmatpush3.bf16.msra.mxu0 %v3585_v26 }
 0x828   :  { %3590 = vmatprep.subr.bf16.mxu0 %v3589_v29 }
 0x82b   :  { %3592 = vmatpush3.bf16.msra.mxu0 %v3589_v29  ;;  %v2966_v29 = vld [vmem:[%s4387_s19] ss:$0 sm:$0xff] }
 0x8f1   :  { %v3324_v39 = vpop.f32.mrb[8].mxu0 }
 0x8f2   :  { %v1207_v40 = vadd.f32 %v3324_v39, %v2956_v38  ;;  %v1190_v42 = vpop.f32.mrb[9].mxu0 }
 0x8f3   :  { %v1206_v43 = vadd.f32 %v2956_v38, %v1190_v42 }
 0x8f4   :  { %v1209_v44 = vadd.f32 %v1207_v40, %v3920_v46 }
 0x8f5   :  { %v1208_v45 = vadd.f32 %v1206_v43, %v3908_v41  ;;  %v1254_v41 = vld [vmem:[%s4380_s14] sm:$0xff] }
 0x8f6   :  { %v1215_v47 = vsel %vm69_vm0, %v1209_v44, 0.0  ;;  %v3569_v59 = vpack.c.bf16 %v1255_v58, %v1254_v41 }
 0x8f7   :  { %1216 = vadd.xlane.f32.xlu1 %v1215_v47  ;;  %v1212_v48 = vsel %vm69_vm0, %v1208_v45, 0.0  ;;  %v2962_v47 = vld [vmem:[%s4385_s17] ss:$0 sm:$0xff] }
 0x8f8   :  { %1213 = vadd.xlane.f32.xlu0 %v1212_v48  ;;  %3570 = vmatprep.subr.bf16.mxu1 %v3569_v59 }
 0x8f9   :  { %3572 = vmatpush3.bf16.msra.mxu1 %v3569_v59 }
 0x8fa   :  { %3574 = vmatprep.subr.bf16.mxu1 %v3573_v62 }
 0x8fd   :  { %3576 = vmatpush3.bf16.msra.mxu1 %v3573_v62 }
 0x984   :  { %v1217_v49 = vpop.xlane.xlu1 %1216 }
 0x985   :  { %v1219_v50 = vmul.f32 0.03125, %v1217_v49  ;;  %v1214_v51 = vpop.xlane.xlu0 %1213 }
 0x986   :  { %v1218_v52 = vmul.f32 0.03125, %v1214_v51 }
 0x987   :  { %v1221_v53 = vsub.f32 %v1209_v44, %v1219_v50 }
 0x988   :  { %v1220_v54 = vsub.f32 %v1208_v45, %v1218_v52 }
 0x989   :  { %v1223_v55 = vmul.f32 %v1221_v53, %v1221_v53 }
 0x98a   :  { %v1222_v56 = vmul.f32 %v1220_v54, %v1220_v54 }
 0x98b   :  { %v1227_v57 = vsel %vm69_vm0, %v1223_v55, 0.0 }
 0x98c   :  { %1228 = vadd.xlane.f32.xlu1 %v1227_v57  ;;  %v1224_v46 = vsel %vm69_vm0, %v1222_v56, 0.0 }
 0x98d   :  { %1225 = vadd.xlane.f32.xlu0 %v1224_v46 }
 0xa19   :  { %v1229_v63 = vpop.xlane.xlu1 %1228 }
 0xa1a   :  { %v1231_v0 = vmul.f32 0.03125, %v1229_v63  ;;  %v1226_v2 = vpop.xlane.xlu0 %1225 }
 0xa1b   :  { %v1230_v3 = vmul.f32 0.03125, %v1226_v2  ;;  %v2968_v2 = vld [vmem:[%s4399_s26 + $0x48] sm:$0xff] }
 0xa1c   :  { %v1233_v4 = vadd.f32 1e-12, %v1231_v0  ;;  %v2967_v0 = vld [vmem:[%s4399_s26 + $0x40] sm:$0xff] }
 0xa1d   :  { %v1232_v5 = vadd.f32 1e-12, %v1230_v3  ;;  %v3593_v3 = vpack.c.bf16 %v2968_v2, %v2967_v0  ;;  %v3018_v0 = vld [vmem:[%s4400_s30 + $0x78] sm:$0xff] }
 0xa1e   :  { %3717 = vrsqrt.f32 %v1233_v4  ;;  %v2983_v4 = vld [vmem:[%s4400_s30 + $0x40] sm:$0xff] }
 0xa1f   :  { %3719 = vrsqrt.f32 %v1232_v5  ;;  %v2984_v5 = vld [vmem:[%s4400_s30 + $0x48] sm:$0xff]  ;;  %3594 = vmatprep.subr.bf16.mxu1 %v3593_v3 }
 0xa28   :  { %v3718_v6 = vpop.eup %3717 }
 0xa29   :  { %v3720_v8 = vpop.eup %3719  ;;  %v1237_v9 = vmul.f32 %v3718_v6, %v1221_v53  ;;  %v3609_v6 = vpack.c.bf16 %v2984_v5, %v2983_v4 }
 0xa2a   :  { %v1236_v10 = vmul.f32 %v3720_v8, %v1220_v54  ;;  %v2970_v8 = vld [vmem:[%s4399_s26 + $0x58] sm:$0xff] }
 0xa2b   :  { %v1245_v12 = vmul.f32 %v2957_v7, %v1237_v9  ;;  %3610 = vmatprep.subr.bf16.mxu0 %v3609_v6 }
 0xa2c   :  { %v1244_v13 = vmul.f32 %v2957_v7, %v1236_v10  ;;  %v2969_v7 = vld [vmem:[%s4399_s26 + $0x50] sm:$0xff] }
 0xa2d   :  { %v1253_v16 = vadd.f32 %v2958_v11, %v1245_v12  ;;  %v3597_v9 = vpack.c.bf16 %v2970_v8, %v2969_v7  ;;  %v2985_v10 = vld [vmem:[%s4400_s30 + $0x50] sm:$0xff] }
 0xa2e   :  { %v1252_v14 = vadd.f32 %v2958_v11, %v1244_v13  ;;  %v2986_v11 = vld [vmem:[%s4400_s30 + $0x58] sm:$0xff]  ;;  %v2975_v13 = vld [vmem:[%s4401_s29 + $0x40] sm:$0xff] }
 0xa2f   :  { %v3613_v12 = vpack.c.bf16 %v2986_v11, %v2985_v10  ;;  %v3004_v11 = vld [vmem:[%s4375_s5 + $0x3] ss:$0 sm:$0xff] }
 0xa30   :  { %3333 = vmatprep.mubr.msk.f32.mxu1 %vm69_vm0, %v1252_v14 }
 0xa31   :  { %3334 = vmatmul.mubr.msk.f32.vlgmr.msra.gmra.mrb[12].mxu1 %vm69_vm0, %v1253_v16 }
 0xa32   :  { %3596 = vmatpush3.bf16.msra.mxu1 %v3593_v3 }
 0xa33   :  { %3598 = vmatprep.subr.bf16.mxu1 %v3597_v9 }
 0xa36   :  { %3600 = vmatpush3.bf16.msra.mxu1 %v3597_v9 }
 0xb04   :  { %v3335_v31 = vpop.f32.mrb[12].mxu1 }
 0xb05   :  { %v1343_v32 = vadd.f32 %v3335_v31, %v2959_v30  ;;  %v1337_v33 = vpop.f32.mrb[13].mxu1 }
 0xb06   :  { %v1338_v34 = vadd.f32 %v2959_v30, %v1337_v33  ;;  %v2978_v33 = vld [vmem:[%s4401_s29 + $0x58] sm:$0xff] }
 0xb07   :  { %v1349_v35 = vmul.f32 0.70710677, %v1343_v32  ;;  %v1347_v43 = vmul.f32 0.5, %v1343_v32  ;;  %v2977_v32 = vld [vmem:[%s4401_s29 + $0x50] sm:$0xff] }
 0xb08   :  { %v1348_v36 = vmul.f32 0.70710677, %v1338_v34  ;;  %v1346_v40 = vmul.f32 0.5, %v1338_v34 }
 0xb09   :  { %3721 = verf.f32 %v1349_v35 }
 0xb0a   :  { %3723 = verf.f32 %v1348_v36  ;;  %v3605_v36 = vpack.c.bf16 %v2978_v33, %v2977_v32  ;;  %v3007_v33 = vld [vmem:[%s4401_s29 + $0x60] sm:$0xff] }
 0xb13   :  { %v3722_v37 = vpop.eup %3721 }
 0xb14   :  { %v3724_v38 = vpop.eup %3723  ;;  %v1353_v39 = vadd.f32 1.0, %v3722_v37  ;;  %v2988_v37 = vld [vmem:[%s4374_s9 + $0x2] ss:$0 sm:$0xff] }
 0xb15   :  { %v1352_v42 = vadd.f32 1.0, %v3724_v38  ;;  %v2972_v38 = vld [vmem:[%s4375_s5 + $0x2] ss:$0 sm:$0xff] }
 0xb16   :  { %v1355_v45 = vmul.f32 %v1353_v39, %v1347_v43 }
 0xb17   :  { %v1354_v44 = vmul.f32 %v1352_v42, %v1346_v40 }
 0xb19   :  { %3352 = vmatprep.mubr.msk.f32.mxu0 %vm1371_vm3, %v1354_v44 }
 0xb1a   :  { %3353 = vmatmul.mubr.msk.f32.vlgmr.msra.gmra.mrb[10].mxu0 %vm1371_vm3, %v1355_v45 }
 0xb1b   :  { %3612 = vmatpush3.bf16.msra.mxu0 %v3609_v6 }
 0xb1c   :  { %3614 = vmatprep.subr.bf16.mxu0 %v3613_v12 }
 0xb1f   :  { %3616 = vmatpush3.bf16.msra.mxu0 %v3613_v12 }
 0xbed   :  { %v3354_v48 = vpop.f32.mrb[10].mxu0 }
 0xbee   :  { %v1450_v49 = vadd.f32 %v3354_v48, %v2962_v47  ;;  %v1444_v50 = vpop.f32.mrb[11].mxu0 }
 0xbef   :  { %v1445_v51 = vadd.f32 %v2962_v47, %v1444_v50 }
 0xbf0   :  { %v1454_v52 = vadd.f32 %v1450_v49, %v1253_v16  ;;  %v2980_v49 = vld [vmem:[%s4376_s7 + $0x2] ss:$0 sm:$0xff] }
 0xbf1   :  { %v1453_v53 = vadd.f32 %v1445_v51, %v1252_v14  ;;  %v2976_v14 = vld [vmem:[%s4401_s29 + $0x48] sm:$0xff] }
 0xbf2   :  { %v1460_v54 = vsel %vm69_vm0, %v1454_v52, 0.0  ;;  %v3601_v16 = vpack.c.bf16 %v2976_v14, %v2975_v13 }
 0xbf3   :  { %1461 = vadd.xlane.f32.xlu1 %v1460_v54  ;;  %v1457_v55 = vsel %vm69_vm0, %v1453_v53, 0.0  ;;  %v3000_v54 = vld [vmem:[%s4399_s26 + $0x68] sm:$0xff] }
 0xbf4   :  { %1458 = vadd.xlane.f32.xlu0 %v1457_v55  ;;  %3602 = vmatprep.subr.bf16.mxu1 %v3601_v16 }
 0xc80   :  { %v1462_v56 = vpop.xlane.xlu1 %1461 }
 0xc81   :  { %v1464_v57 = vmul.f32 0.03125, %v1462_v56  ;;  %v1459_v46 = vpop.xlane.xlu0 %1458 }
 0xc82   :  { %v1463_v41 = vmul.f32 0.03125, %v1459_v46  ;;  %v3001_v46 = vld [vmem:[%s4399_s26 + $0x70] sm:$0xff] }
 0xc83   :  { %v1466_v58 = vsub.f32 %v1454_v52, %v1464_v57 }
 0xc84   :  { %v1465_v59 = vsub.f32 %v1453_v53, %v1463_v41  ;;  %v2999_v53 = vld [vmem:[%s4399_s26 + $0x60] sm:$0xff]  ;;  %v3002_v41 = vld [vmem:[%s4399_s26 + $0x78] sm:$0xff] }
 0xc85   :  { %v1468_v60 = vmul.f32 %v1466_v58, %v1466_v58  ;;  %v3627_v57 = vpack.c.bf16 %v3000_v54, %v2999_v53 }
 0xc86   :  { %v1467_v61 = vmul.f32 %v1465_v59, %v1465_v59 }
 0xc87   :  { %v1472_v62 = vsel %vm69_vm0, %v1468_v60, 0.0  ;;  %v3015_v60 = vld [vmem:[%s4400_s30 + $0x60] sm:$0xff] }
 0xc88   :  { %1473 = vadd.xlane.f32.xlu1 %v1472_v62  ;;  %v1469_v63 = vsel %vm69_vm0, %v1467_v61, 0.0  ;;  %v3016_v61 = vld [vmem:[%s4400_s30 + $0x68] sm:$0xff] }
 0xc89   :  { %1470 = vadd.xlane.f32.xlu0 %v1469_v63  ;;  %v3643_v62 = vpack.c.bf16 %v3016_v61, %v3015_v60  ;;  %v3017_v63 = vld [vmem:[%s4400_s30 + $0x70] sm:$0xff] }
 0xc8a   :  { %v3647_v2 = vpack.c.bf16 %v3018_v0, %v3017_v63 }
 0xd15   :  { %v1474_v17 = vpop.xlane.xlu1 %1473 }
 0xd16   :  { %v1476_v19 = vmul.f32 0.03125, %v1474_v17  ;;  %v1471_v20 = vpop.xlane.xlu0 %1470 }
 0xd17   :  { %v1475_v21 = vmul.f32 0.03125, %v1471_v20 }
 0xd18   :  { %v1478_v22 = vadd.f32 1e-12, %v1476_v19 }
 0xd19   :  { %v1477_v23 = vadd.f32 1e-12, %v1475_v21 }
 0xd1a   :  { %3725 = vrsqrt.f32 %v1478_v22 }
 0xd1b   :  { %3727 = vrsqrt.f32 %v1477_v23 }
 0xd24   :  { %v3726_v24 = vpop.eup %3725 }
 0xd25   :  { %v3728_v26 = vpop.eup %3727  ;;  %v1482_v27 = vmul.f32 %v3726_v24, %v1466_v58 }
 0xd26   :  { %v1481_v28 = vmul.f32 %v3728_v26, %v1465_v59  ;;  %v3631_v59 = vpack.c.bf16 %v3002_v41, %v3001_v46 }
 0xd27   :  { %v1490_v30 = vmul.f32 %v2965_v25, %v1482_v27 }
 0xd28   :  { %v1489_v31 = vmul.f32 %v2965_v25, %v1481_v28 }
 0xd29   :  { %v4165_v35 = vadd.f32 %v2966_v29, %v1490_v30 }
 0xd2a   :  { %v4163_v34 = vadd.f32 %v2966_v29, %v1489_v31 }
 0xd2c   :  { %3363 = vmatprep.mubr.msk.f32.mxu1 %vm69_vm0, %v4163_v34  ;;  %3385 = vmatprep.mubr.msk.f32.mxu0 %vm69_vm0, %v4163_v34 }
 0xd2d   :  { %3364 = vmatmul.mubr.msk.f32.vlgmr.msra.gmra.mrb[14].mxu1 %vm69_vm0, %v4165_v35  ;;  %3386 = vmatmul.mubr.msk.f32.vlgmr.msra.gmra.mrb[12].mxu0 %vm69_vm0, %v4165_v35 }
 0xd2e   :  { %3604 = vmatpush3.bf16.msra.mxu1 %v3601_v16  ;;  %3374 = vmatprep.mubr.msk.f32.mxu1 %vm69_vm0, %v4163_v34  ;;  %v3020_v16 = vld [vmem:[%s4374_s9 + $0x3] ss:$0 sm:$0xff] }
 0xd2f   :  { %3606 = vmatprep.subr.bf16.mxu1 %v3605_v36 }
 0xd32   :  { %3608 = vmatpush3.bf16.msra.mxu1 %v3605_v36  ;;  %v3008_v36 = vld [vmem:[%s4401_s29 + $0x68] sm:$0xff] }
 0xd35   :  { %3375 = vmatmul.mubr.msk.f32.vlgmr.msra.gmra.mrb[16].mxu1 %vm69_vm0, %v4165_v35 }
 0xe00   :  { %v3365_v39 = vpop.f32.mrb[14].mxu1  ;;  %v3387_v40 = vpop.f32.mrb[12].mxu0 }
 0xe01   :  { %v1766_v42 = vadd.f32 %v3387_v40, %v2988_v37  ;;  %v1584_v43 = vpop.f32.mrb[15].mxu1  ;;  %v1760_v44 = vpop.f32.mrb[13].mxu0  ;;  %v1590_v58 = vadd.f32 %v3365_v39, %v2972_v38 }
 0xe02   :  { %v1585_v45 = vadd.f32 %v2972_v38, %v1584_v43  ;;  %v1761_v47 = vadd.f32 %v2988_v37, %v1760_v44  ;;  %v3635_v37 = vpack.c.bf16 %v3008_v36, %v3007_v33  ;;  %v3010_v43 = vld [vmem:[%s4401_s29 + $0x78] sm:$0xff] }
 0xe04   :  { %v3623_v48 = vpack.c.bf16 %v1766_v42, %v1761_v47  ;;  %3392 = vmatprep.mubr.msk.f32.mxu1 %vm379_vm1, %v1585_v45  ;;  %v3009_v42 = vld [vmem:[%s4401_s29 + $0x70] sm:$0xff] }
 0xe06   :  { %3624 = vmatprep.subr.bf16.mxu0 %v3623_v48 }
 0xe07   :  { %3626 = vmatpush3.bf16.msra.mxu0 %v3623_v48  ;;  %v3639_v48 = vpack.c.bf16 %v3010_v43, %v3009_v42 }
 0xe08   :  { %v3376_v50 = vpop.f32.mrb[16].mxu1  ;;  %3636 = vmatprep.subr.bf16.mxu0 %v3635_v37 }
 0xe09   :  { %v1678_v51 = vadd.f32 %v3376_v50, %v2980_v49  ;;  %v1672_v52 = vpop.f32.mrb[17].mxu1 }
 0xe0a   :  { %v1673_v55 = vadd.f32 %v2980_v49, %v1672_v52  ;;  %v3012_v52 = vld [vmem:[%s4376_s7 + $0x3] ss:$0 sm:$0xff] }
 0xe0c   :  { %v3617_v56 = vpack.c.bf16 %v1678_v51, %v1673_v55 }
 0xe0e   :  { %3619 = vmatprep.subr.msk.bf16.mxu1 %vm3948_vm2, %v3617_v56 }
 0xe0f   :  { %3622 = vmatpush3.bf16.xpose.msk.msra.mxu1 %vm3948_vm2, %v3617_v56 }
 0xe10   :  { %3628 = vmatprep.subr.bf16.mxu1 %v3627_v57 }
 0xe16   :  { %3393 = vmatmul.mubr.msk.f32.vlgmr.msra.gmra.mrb[18].mxu1 %vm379_vm1, %v1590_v58 }
 0xe17   :  { %3630 = vmatpush3.bf16.msra.mxu1 %v3627_v57  ;;  %3410 = vmatprep.mubr.msk.f32.mxu1 %vm69_vm0, %v4163_v34 }
 0xe18   :  { %3632 = vmatprep.subr.bf16.mxu1 %v3631_v59 }
 0xe1b   :  { %3634 = vmatpush3.bf16.msra.mxu1 %v3631_v59 }
 0xe1c   :  { %3644 = vmatprep.subr.bf16.mxu1 %v3643_v62 }
 0xe1e   :  { %3411 = vmatmul.mubr.msk.f32.vlgmr.msra.gmra.mrb[20].mxu1 %vm69_vm0, %v4165_v35 }
 0xe1f   :  { %3646 = vmatpush3.bf16.msra.mxu1 %v3643_v62  ;;  %3432 = vmatprep.mubr.msk.f32.mxu1 %vm69_vm0, %v4163_v34 }
 0xe20   :  { %3648 = vmatprep.subr.bf16.mxu1 %v3647_v2 }
 0xe23   :  { %3650 = vmatpush3.bf16.msra.mxu1 %v3647_v2 }
 0xe26   :  { %3433 = vmatmul.mubr.msk.f32.vlgmr.msra.gmra.mrb[22].mxu1 %vm69_vm0, %v4165_v35 }
 0xee9   :  { %v3394_v3 = vpop.f32.mrb[18].mxu1 }
 0xeea   :  { %v1857_v4 = vmul.f32 0.25, %v3394_v3  ;;  %v1847_v5 = vpop.f32.mrb[19].mxu1 }
 0xeeb   :  { %v1856_v6 = vmul.f32 0.25, %v1847_v5 }
 0xeec   :  { %v1859_v7 = vadd.f32 %v1857_v4, %v3986_v15 }
 0xeed   :  { %v1858_v8 = vadd.f32 %v1856_v6, %v3991_v18 }
 0xeee   :  { %v1863_v9 = vsel %vm379_vm1, %v1859_v7, -inf }
 0xeef   :  { %1864 = vmax.xlane.f32.xlu1 %v1863_v9  ;;  %v1860_v10 = vsel %vm379_vm1, %v1858_v8, -inf  ;;  %v3030_v9 = vld [vmem:[%s4378_s10 + $0x38] sm:$0xff] }
 0xef0   :  { %1861 = vmax.xlane.f32.xlu0 %v1860_v10 }
 0xef1   :  { %v3412_v12 = vpop.f32.mrb[20].mxu1 }
 0xef2   :  { %v2051_v13 = vadd.f32 %v3412_v12, %v3004_v11  ;;  %v2045_v14 = vpop.f32.mrb[21].mxu1 }
 0xef3   :  { %v2046_v49 = vadd.f32 %v3004_v11, %v2045_v14 }
 0xef9   :  { %v3434_v17 = vpop.f32.mrb[22].mxu1 }
 0xefa   :  { %v2227_v19 = vadd.f32 %v3434_v17, %v3020_v16  ;;  %v2221_v20 = vpop.f32.mrb[23].mxu1 }
 0xefb   :  { %v2222_v21 = vadd.f32 %v3020_v16, %v2221_v20  ;;  %v2998_v20 = vld [vmem:[%s4378_s10 + $0x28] sm:$0xff] }
 0xefd   :  { %v3657_v22 = vpack.c.bf16 %v2227_v19, %v2222_v21  ;;  %v2997_v19 = vld [vmem:[%s4378_s10 + $0x20] sm:$0xff] }
 0xefe   :  { %v3665_v21 = vpack.c.bf16 %v2998_v20, %v2997_v19 }
 0xeff   :  { %3658 = vmatprep.subr.bf16.mxu1 %v3657_v22 }
 0xf00   :  { %3660 = vmatpush3.bf16.msra.mxu1 %v3657_v22 }
 0xf7c   :  { %v1865_v23 = vpop.xlane.xlu1 %1864 }
 0xf7d   :  { %v1867_v24 = vsub.f32 %v1859_v7, %v1865_v23  ;;  %v1862_v25 = vpop.xlane.xlu0 %1861 }
 0xf7e   :  { %v1866_v26 = vsub.f32 %v1858_v8, %v1862_v25  ;;  %v3029_v8 = vld [vmem:[%s4378_s10 + $0x30] sm:$0xff] }
 0xf7f   :  { %v1870_v27 = vmul.f32 1.442695, %v1867_v24  ;;  %v3661_v10 = vpack.c.bf16 %v3030_v9, %v3029_v8  ;;  %v3036_v24 = vld [vmem:[%s4379_s11 + $0x1] ss:$0 sm:$0xff]  ;;  %v3055_v8 = vld [vmem:[%s4383_s16 + $0x70] sm:$0xff]  ;;  %v3056_v9 = vld [vmem:[%s4383_s16 + $0x78] sm:$0xff] }
 0xf80   :  { %v1868_v28 = vmul.f32 1.442695, %v1866_v26 }
 0xf81   :  { %3729 = vpow2.f32 %v1870_v27 }
 0xf82   :  { %3731 = vpow2.f32 %v1868_v28 }
 0xf8b   :  { %v3730_v29 = vpop.eup %3729 }
 0xf8c   :  { %v3732_v30 = vpop.eup %3731  ;;  %v1875_v31 = vsel %vm379_vm1, %v3730_v29, 0.0 }
 0xf8d   :  { %1876 = vadd.xlane.f32.xlu1 %v1875_v31  ;;  %v1872_v32 = vsel %vm379_vm1, %v3732_v30, 0.0 }
 0xf8e   :  { %1873 = vadd.xlane.f32.xlu0 %v1872_v32 }
0x101a   :  { %v1877_v38 = vpop.xlane.xlu1 %1876 }
0x101b   :  { %3733 = vrcp.f32 %v1877_v38  ;;  %v1874_v39 = vpop.xlane.xlu0 %1873 }
0x101c   :  { %3735 = vrcp.f32 %v1874_v39 }
0x1025   :  { %v3734_v40 = vpop.eup %3733 }
0x1026   :  { %v3736_v44 = vpop.eup %3735  ;;  %v1881_v47 = vmul.f32 %v3734_v40, %v3730_v29 }
0x1027   :  { %v1880_v45 = vmul.f32 %v3736_v44, %v3732_v30 }
0x1029   :  { %3399 = vmatprep.mubr.msk.f32.mxu0 %vm379_vm1, %v1880_v45  ;;  %v3042_v45 = vld [vmem:[%s4380_s14 + $0x28] sm:$0xff] }
0x102a   :  { %3400 = vmatmul.mubr.msk.f32.vlgmr.msra.gmra.mrb[14].mxu0 %vm379_vm1, %v1881_v47 }
0x102b   :  { %3638 = vmatpush3.bf16.msra.mxu0 %v3635_v37  ;;  %3421 = vmatprep.mubr.msk.f32.mxu0 %vm69_vm0, %v4163_v34 }
0x102c   :  { %3640 = vmatprep.subr.bf16.mxu0 %v3639_v48 }
0x102f   :  { %3642 = vmatpush3.bf16.msra.mxu0 %v3639_v48  ;;  %v3043_v48 = vld [vmem:[%s4380_s14 + $0x30] sm:$0xff] }
0x1032   :  { %3422 = vmatmul.mubr.msk.f32.vlgmr.msra.gmra.mrb[16].mxu0 %vm69_vm0, %v4165_v35 }
0x1033   :  { %3439 = vmatprep.mubr.msk.f32.mxu0 %vm379_vm1, %v2046_v49  ;;  %v3044_v49 = vld [vmem:[%s4380_s14 + $0x38] sm:$0xff] }
0x10fd   :  { %v3401_v50 = vpop.f32.mrb[14].mxu0 }
0x10fe   :  { %v1954_v51 = vpop.f32.mrb[15].mxu0 }
0x1105   :  { %v3423_v53 = vpop.f32.mrb[16].mxu0 }
0x1106   :  { %v2139_v54 = vadd.f32 %v3423_v53, %v3012_v52  ;;  %v2133_v55 = vpop.f32.mrb[17].mxu0 }
0x1107   :  { %v2134_v56 = vadd.f32 %v3012_v52, %v2133_v55 }
0x1109   :  { %v3651_v57 = vpack.c.bf16 %v2139_v54, %v2134_v56 }
0x110b   :  { %3653 = vmatprep.subr.msk.bf16.mxu0 %vm3948_vm2, %v3651_v57 }
0x110c   :  { %3656 = vmatpush3.bf16.xpose.msk.msra.mxu0 %vm3948_vm2, %v3651_v57 }
0x110d   :  { %3662 = vmatprep.subr.bf16.mxu0 %v3661_v10 }
0x1113   :  { %3440 = vmatmul.mubr.msk.f32.vlgmr.msra.gmra.mrb[18].mxu0 %vm379_vm1, %v2051_v13 }
0x1114   :  { %3664 = vmatpush3.bf16.msra.mxu0 %v3661_v10  ;;  %v3689_v10 = vpack.c.bf16 %v3056_v9, %v3055_v8 }
0x1115   :  { %3666 = vmatprep.subr.bf16.mxu0 %v3665_v21 }
0x11e6   :  { %v3441_v46 = vpop.f32.mrb[18].mxu0 }
0x11e7   :  { %v2318_v41 = vmul.f32 0.25, %v3441_v46  ;;  %v2308_v58 = vpop.f32.mrb[19].mxu0  ;;  %v3039_v46 = vld [vmem:[%s4381_s12 + $0x1] ss:$0 sm:$0xff] }
0x11e8   :  { %v2317_v59 = vmul.f32 0.25, %v2308_v58 }
0x11e9   :  { %v2320_v60 = vadd.f32 %v2318_v41, %v3986_v15 }
0x11ea   :  { %v2319_v61 = vadd.f32 %v2317_v59, %v3991_v18 }
0x11eb   :  { %v2324_v62 = vsel %vm379_vm1, %v2320_v60, -inf }
0x11ec   :  { %2325 = vmax.xlane.f32.xlu1 %v2324_v62  ;;  %v2321_v63 = vsel %vm379_vm1, %v2319_v61, -inf }
0x11ed   :  { %2322 = vmax.xlane.f32.xlu0 %v2321_v63 }
0x1279   :  { %v2326_v0 = vpop.xlane.xlu1 %2325 }
0x127a   :  { %v2328_v2 = vsub.f32 %v2320_v60, %v2326_v0  ;;  %v2323_v1 = vpop.xlane.xlu0 %2322  ;;  %v3040_v60 = vld [vmem:[%s4382_s13 + $0x1] ss:$0 sm:$0xff] }
0x127b   :  { %v2327_v3 = vsub.f32 %v2319_v61, %v2323_v1  ;;  %v3050_v1 = vld [vmem:[%s4383_s16 + $0x48] sm:$0xff] }
0x127c   :  { %v2331_v4 = vmul.f32 1.442695, %v2328_v2  ;;  %v3049_v2 = vld [vmem:[%s4383_s16 + $0x40] sm:$0xff] }
0x127d   :  { %v2329_v5 = vmul.f32 1.442695, %v2327_v3  ;;  %v3677_v3 = vpack.c.bf16 %v3050_v1, %v3049_v2 }
0x127e   :  { %3737 = vpow2.f32 %v2331_v4  ;;  %v3051_v4 = vld [vmem:[%s4383_s16 + $0x50] sm:$0xff] }
0x127f   :  { %3739 = vpow2.f32 %v2329_v5  ;;  %v3052_v5 = vld [vmem:[%s4383_s16 + $0x58] sm:$0xff] }
0x1288   :  { %v3738_v6 = vpop.eup %3737 }
0x1289   :  { %v3740_v7 = vpop.eup %3739  ;;  %v2336_v15 = vsel %vm379_vm1, %v3738_v6, 0.0 }
0x128a   :  { %2337 = vadd.xlane.f32.xlu1 %v2336_v15  ;;  %v2333_v18 = vsel %vm379_vm1, %v3740_v7, 0.0  ;;  %v3054_v15 = vld [vmem:[%s4383_s16 + $0x68] sm:$0xff] }
0x128b   :  { %2334 = vadd.xlane.f32.xlu0 %v2333_v18 }
0x1317   :  { %v2338_v11 = vpop.xlane.xlu1 %2337 }
0x1318   :  { %3741 = vrcp.f32 %v2338_v11  ;;  %v2335_v12 = vpop.xlane.xlu0 %2334  ;;  %v3046_v11 = vld [vmem:[%s4384_s15 + $0x1] ss:$0 sm:$0xff] }
0x1319   :  { %3743 = vrcp.f32 %v2335_v12 }
0x1322   :  { %v3742_v13 = vpop.eup %3741 }
0x1323   :  { %v3744_v14 = vpop.eup %3743  ;;  %v2342_v17 = vmul.f32 %v3742_v13, %v3738_v6  ;;  %v3681_v6 = vpack.c.bf16 %v3052_v5, %v3051_v4 }
0x1324   :  { %v2341_v16 = vmul.f32 %v3744_v14, %v3740_v7  ;;  %v3053_v7 = vld [vmem:[%s4383_s16 + $0x60] sm:$0xff] }
0x1325   :  { %v3685_v18 = vpack.c.bf16 %v3054_v15, %v3053_v7 }
0x1326   :  { %3446 = vmatprep.mubr.msk.f32.mxu1 %vm379_vm1, %v2341_v16 }
0x1327   :  { %3447 = vmatmul.mubr.msk.f32.vlgmr.msra.gmra.mrb[24].mxu1 %vm379_vm1, %v2342_v17 }
0x13fa   :  { %v3448_v22 = vpop.f32.mrb[24].mxu1 }
0x13fb   :  { %v2415_v23 = vpop.f32.mrb[25].mxu1 }
0x13fc   :  { %3453 = vmatprep.mubr.msk.f32.mxu0 %vm379_vm1, %v2415_v23 }
0x13fd   :  { %3454 = vmatmul.mubr.msk.f32.vlgmr.msra.gmra.mrb[20].mxu0 %vm379_vm1, %v3448_v22 }
0x13fe   :  { %3668 = vmatpush3.bf16.msra.mxu0 %v3665_v21  ;;  %3460 = vmatprep.mubr.msk.f32.mxu0 %vm379_vm1, %v1954_v51 }
0x13ff   :  { %3678 = vmatprep.subr.bf16.mxu0 %v3677_v3 }
0x1405   :  { %3461 = vmatmul.mubr.msk.f32.vlgmr.msra.gmra.mrb[20].mxu0 %vm379_vm1, %v3401_v50  ;;  %v3673_v50 = vpack.c.bf16 %v3044_v49, %v3043_v48 }
0x1406   :  { %3680 = vmatpush3.bf16.msra.mxu0 %v3677_v3 }
0x1407   :  { %3682 = vmatprep.subr.bf16.mxu0 %v3681_v6 }
0x140a   :  { %3684 = vmatpush3.bf16.msra.mxu0 %v3681_v6 }
0x140b   :  { %3686 = vmatprep.subr.bf16.mxu0 %v3685_v18 }
0x140e   :  { %3688 = vmatpush3.bf16.msra.mxu0 %v3685_v18 }
0x140f   :  { %3690 = vmatprep.subr.bf16.mxu0 %v3689_v10 }
0x1412   :  { %3692 = vmatpush3.bf16.msra.mxu0 %v3689_v10 }
0x14d8   :  { %v3462_v25 = vpop.f32.mrb[20].mxu0 }
0x14d9   :  { %v2598_v26 = vadd.f32 %v3462_v25, %v3036_v24  ;;  %v2580_v27 = vpop.f32.mrb[21].mxu0 }
0x14da   :  { %v2597_v28 = vadd.f32 %v3036_v24, %v2580_v27 }
0x14db   :  { %v2600_v29 = vadd.f32 %v2598_v26, %v4165_v35 }
0x14dc   :  { %v2599_v30 = vadd.f32 %v2597_v28, %v4163_v34  ;;  %v3041_v34 = vld [vmem:[%s4380_s14 + $0x20] sm:$0xff] }
0x14dd   :  { %v2608_v31 = vsel %vm69_vm0, %v2600_v29, 0.0  ;;  %v3669_v47 = vpack.c.bf16 %v3042_v45, %v3041_v34  ;;  %v3058_v28 = vld [vmem:[%s4385_s17 + $0x1] ss:$0 sm:$0xff] }
0x14de   :  { %2609 = vadd.xlane.f32.xlu1 %v2608_v31  ;;  %v2605_v32 = vsel %vm69_vm0, %v2599_v30, 0.0 }
0x14df   :  { %2606 = vadd.xlane.f32.xlu0 %v2605_v32  ;;  %3670 = vmatprep.subr.bf16.mxu1 %v3669_v47 }
0x14e0   :  { %3672 = vmatpush3.bf16.msra.mxu1 %v3669_v47 }
0x14e1   :  { %3674 = vmatprep.subr.bf16.mxu1 %v3673_v50 }
0x14e4   :  { %3676 = vmatpush3.bf16.msra.mxu1 %v3673_v50 }
0x156b   :  { %v2610_v33 = vpop.xlane.xlu1 %2609 }
0x156c   :  { %v2612_v36 = vmul.f32 0.03125, %v2610_v33  ;;  %v2607_v37 = vpop.xlane.xlu0 %2606 }
0x156d   :  { %v2611_v38 = vmul.f32 0.03125, %v2607_v37 }
0x156e   :  { %v2614_v39 = vsub.f32 %v2600_v29, %v2612_v36 }
0x156f   :  { %v2613_v40 = vsub.f32 %v2599_v30, %v2611_v38 }
0x1570   :  { %v2616_v42 = vmul.f32 %v2614_v39, %v2614_v39 }
0x1571   :  { %v2615_v43 = vmul.f32 %v2613_v40, %v2613_v40 }
0x1572   :  { %v2620_v44 = vsel %vm69_vm0, %v2616_v42, 0.0 }
0x1573   :  { %2621 = vadd.xlane.f32.xlu1 %v2620_v44  ;;  %v2617_v35 = vsel %vm69_vm0, %v2615_v43, 0.0 }
0x1574   :  { %2618 = vadd.xlane.f32.xlu0 %v2617_v35 }
0x1600   :  { %v2622_v51 = vpop.xlane.xlu1 %2621 }
0x1601   :  { %v2624_v52 = vmul.f32 0.03125, %v2622_v51  ;;  %v2619_v53 = vpop.xlane.xlu0 %2618 }
0x1602   :  { %v2623_v54 = vmul.f32 0.03125, %v2619_v53 }
0x1603   :  { %v2626_v55 = vadd.f32 1e-12, %v2624_v52 }
0x1604   :  { %v2625_v56 = vadd.f32 1e-12, %v2623_v54 }
0x1605   :  { %3745 = vrsqrt.f32 %v2626_v55 }
0x1606   :  { %3747 = vrsqrt.f32 %v2625_v56  ;;  %v3063_v56 = vld [vmem:[%s4386_s18 + $0x1] ss:$0 sm:$0xff] }
0x160f   :  { %v3746_v57 = vpop.eup %3745 }
0x1610   :  { %v3748_v41 = vpop.eup %3747  ;;  %v2630_v58 = vmul.f32 %v3746_v57, %v2614_v39 }
0x1611   :  { %v2629_v59 = vmul.f32 %v3748_v41, %v2613_v40  ;;  %v3064_v41 = vld [vmem:[%s4387_s19 + $0x1] ss:$0 sm:$0xff] }
0x1612   :  { %v2638_v61 = vmul.f32 %v3039_v46, %v2630_v58 }
0x1613   :  { %v2637_v62 = vmul.f32 %v3039_v46, %v2629_v59 }
0x1614   :  { %v2646_v0 = vadd.f32 %v3040_v60, %v2638_v61 }
0x1615   :  { %v2645_v63 = vadd.f32 %v3040_v60, %v2637_v62 }
0x1617   :  { %3471 = vmatprep.mubr.msk.f32.mxu1 %vm69_vm0, %v2645_v63 }
0x1618   :  { %3472 = vmatmul.mubr.msk.f32.vlgmr.msra.gmra.mrb[26].mxu1 %vm69_vm0, %v2646_v0 }
0x16eb   :  { %v3473_v12 = vpop.f32.mrb[26].mxu1 }
0x16ec   :  { %v2738_v13 = vadd.f32 %v3473_v12, %v3046_v11  ;;  %v2732_v14 = vpop.f32.mrb[27].mxu1 }
0x16ed   :  { %v2733_v16 = vadd.f32 %v3046_v11, %v2732_v14 }
0x16ee   :  { %v2744_v17 = vmul.f32 0.70710677, %v2738_v13  ;;  %v2742_v25 = vmul.f32 0.5, %v2738_v13 }
0x16ef   :  { %v2743_v19 = vmul.f32 0.70710677, %v2733_v16  ;;  %v2741_v23 = vmul.f32 0.5, %v2733_v16 }
0x16f0   :  { %3749 = verf.f32 %v2744_v17 }
0x16f1   :  { %3751 = verf.f32 %v2743_v19 }
0x16fa   :  { %v3750_v20 = vpop.eup %3749 }
0x16fb   :  { %v3752_v21 = vpop.eup %3751  ;;  %v2748_v22 = vadd.f32 1.0, %v3750_v20 }
0x16fc   :  { %v2747_v24 = vadd.f32 1.0, %v3752_v21 }
0x16fd   :  { %v2750_v27 = vmul.f32 %v2748_v22, %v2742_v25 }
0x16fe   :  { %v2749_v26 = vmul.f32 %v2747_v24, %v2741_v23 }
0x1700   :  { %3490 = vmatprep.mubr.msk.f32.mxu0 %vm1371_vm3, %v2749_v26 }
0x1701   :  { %3491 = vmatmul.mubr.msk.f32.vlgmr.msra.gmra.mrb[22].mxu0 %vm1371_vm3, %v2750_v27 }
0x17d4   :  { %v3492_v29 = vpop.f32.mrb[22].mxu0 }
0x17d5   :  { %v2846_v30 = vadd.f32 %v3492_v29, %v3058_v28  ;;  %v2840_v31 = vpop.f32.mrb[23].mxu0 }
0x17d6   :  { %v2841_v32 = vadd.f32 %v3058_v28, %v2840_v31 }
0x17d7   :  { %v2850_v33 = vadd.f32 %v2846_v30, %v2646_v0 }
0x17d8   :  { %v2849_v36 = vadd.f32 %v2841_v32, %v2645_v63 }
0x17d9   :  { %v2858_v37 = vsel %vm69_vm0, %v2850_v33, 0.0 }
0x17da   :  { %2859 = vadd.xlane.f32.xlu1 %v2858_v37  ;;  %v2855_v38 = vsel %vm69_vm0, %v2849_v36, 0.0 }
0x17db   :  { %2856 = vadd.xlane.f32.xlu0 %v2855_v38 }
0x1867   :  { %v2860_v39 = vpop.xlane.xlu1 %2859 }
0x1868   :  { %v2862_v40 = vmul.f32 0.03125, %v2860_v39  ;;  %v2857_v42 = vpop.xlane.xlu0 %2856 }
0x1869   :  { %v2861_v43 = vmul.f32 0.03125, %v2857_v42 }
0x186a   :  { %v2864_v44 = vsub.f32 %v2850_v33, %v2862_v40 }
0x186b   :  { %v2863_v35 = vsub.f32 %v2849_v36, %v2861_v43 }
0x186c   :  { %v2866_v34 = vmul.f32 %v2864_v44, %v2864_v44 }
0x186d   :  { %v2865_v45 = vmul.f32 %v2863_v35, %v2863_v35 }
0x186e   :  { %v2870_v47 = vsel %vm69_vm0, %v2866_v34, 0.0 }
0x186f   :  { %2871 = vadd.xlane.f32.xlu1 %v2870_v47  ;;  %v2867_v48 = vsel %vm69_vm0, %v2865_v45, 0.0 }
0x1870   :  { %2868 = vadd.xlane.f32.xlu0 %v2867_v48 }
0x18fc   :  { %v2872_v49 = vpop.xlane.xlu1 %2871 }
0x18fd   :  { %v2874_v50 = vmul.f32 0.03125, %v2872_v49  ;;  %v2869_v51 = vpop.xlane.xlu0 %2868 }
0x18fe   :  { %v2873_v52 = vmul.f32 0.03125, %v2869_v51 }
0x18ff   :  { %v2876_v53 = vadd.f32 1e-12, %v2874_v50 }
0x1900   :  { %v2875_v54 = vadd.f32 1e-12, %v2873_v52 }
0x1901   :  { %3753 = vrsqrt.f32 %v2876_v53 }
0x1902   :  { %3755 = vrsqrt.f32 %v2875_v54 }
0x190b   :  { %v3754_v55 = vpop.eup %3753 }
0x190c   :  { %v3756_v57 = vpop.eup %3755  ;;  %v2880_v46 = vmul.f32 %v3754_v55, %v2864_v44 }
0x190d   :  { %v2879_v58 = vmul.f32 %v3756_v57, %v2863_v35 }
0x190e   :  { %v2888_v59 = vmul.f32 %v3063_v56, %v2880_v46 }
0x190f   :  { %v2887_v60 = vmul.f32 %v3063_v56, %v2879_v58 }
0x1910   :  { %v2896_v61 = vadd.f32 %v3064_v41, %v2888_v59 }
0x1911   :  { %v2895_v62 = vadd.f32 %v3064_v41, %v2887_v60 }
0x1912   :  { %2898 = vst.msk [vmem:[%s4388_s20 + $0x8] sm:$0xff] %vm69_vm0, %v2896_v61 }
0x1913   :  { %2897 = vst.msk [vmem:[%s4388_s20] sm:$0xff] %vm69_vm0, %v2895_v62 }

</bundles_post_ra>
